<compile_context>
chip_gen: v7x
topology: tpu7x:2x2x1
jax: 0.10.0
libtpu: 0.0.40
codegen_flags: <defaults>
</compile_context>

<pallas_src>
import numpy as np

import jax
import jax.numpy as jnp
from jax.experimental import pallas as pl
from jax.experimental.pallas import tpu as pltpu


# ----------------------------------------------------------------------------
# Fused forward kernel.  Activations are 2-D lane-dense values
# (rows = image rows, lanes = W*C); vertical 'same' padding uses small padded
# VMEM scratch buffers; everything else is MXU matmuls + VPU elementwise.
# ----------------------------------------------------------------------------
def _fcnn_kernel(x_ref, w1_ref, b1_ref, w2_ref, b2_ref, te_ref, to_ref,
                 se_ref, so_ref, w3_ref, b3_ref, ru_ref, w4_ref, b4_ref,
                 o_ref, p1_ref, p2_ref, p3_ref, p4_ref):
    H = x_ref.shape[1]          # full-resolution rows (16)
    H2 = H // 2                 # pooled rows (8)

    def conv_rows(pin_ref, wk_ref, b_ref, rows):
        """'same' 3x3 conv = 3 row-shifted matmuls against banded weights."""
        lout = wk_ref.shape[2]
        acc = jnp.zeros((rows, lout), jnp.float32)
        for kh in range(wk_ref.shape[0]):
            acc = acc + jnp.dot(pin_ref[kh:kh + rows, :], wk_ref[kh],
                                preferred_element_type=jnp.float32)
        return acc + b_ref[...]                       # bias pre-tiled to lanes

    def write_padded(p_ref, val, rows):
        """val -> rows [1, rows] of a zeroed (rows+2, L) scratch (vertical pad)."""
        p_ref[...] = jnp.zeros_like(p_ref)
        p_ref[1:rows + 1, :] = val

    # conv1 + ReLU                              (H, W*C0) -> (H, W*C1)
    write_padded(p1_ref, x_ref[0], H)
    a1 = jnp.maximum(conv_rows(p1_ref, w1_ref, b1_ref, H), 0.0)

    # conv2 + ReLU                              (H, W*C1) -> (H, W*C1)
    write_padded(p2_ref, a1, H)
    a2 = jnp.maximum(conv_rows(p2_ref, w2_ref, b2_ref, H), 0.0)

    # maxpool 2x2: row-pair max via row-selection matmuls, then column-pair max
    # via lane-selection matmuls (stays on the MXU; no strided relayouts).
    vmax = jnp.maximum(
        jnp.dot(te_ref[...], a2, preferred_element_type=jnp.float32),
        jnp.dot(to_ref[...], a2, preferred_element_type=jnp.float32))
    pooled = jnp.maximum(
        jnp.dot(vmax, se_ref[...], preferred_element_type=jnp.float32),
        jnp.dot(vmax, so_ref[...], preferred_element_type=jnp.float32))

    # conv3 + ReLU (half resolution)            (H2, W2*C2) -> (H2, W2*C3)
    write_padded(p3_ref, pooled, H2)
    a3 = jnp.maximum(conv_rows(p3_ref, w3_ref, b3_ref, H2), 0.0)

    # nearest-2x upsample: vertical replication = row-replication matmul;
    # horizontal replication is already folded into conv4's banded weights.
    up = jnp.dot(ru_ref[...], a3, preferred_element_type=jnp.float32)
    write_padded(p4_ref, up, H)

    # conv4 + sigmoid                           (H, W2*C3) -> (H, W*C4)
    a4 = jax.nn.sigmoid(conv_rows(p4_ref, w4_ref, b4_ref, H))
    o_ref[0] = a4


# ----------------------------------------------------------------------------
# One-time weight packing: fold horizontal taps / padding / channel mixing
# (and, for conv4, horizontal nearest-upsampling) into banded matrices.
# ----------------------------------------------------------------------------
def _band_weights(w_hwio, width):
    """(KH,KW,Cin,Cout) -> (KH, width*Cin, width*Cout), 'same' conv along W."""
    kh_n, kw_n, _, _ = w_hwio.shape
    pad = (kw_n - 1) // 2
    mats = []
    for kh in range(kh_n):
        acc = None
        for kw in range(kw_n):
            p = np.zeros((width, width), np.float32)
            for wo in range(width):
                wi = wo + kw - pad
                if 0 <= wi < width:
                    p[wi, wo] = 1.0
            term = jnp.kron(jnp.asarray(p), w_hwio[kh, kw])
            acc = term if acc is None else acc + term
        mats.append(acc)
    return jnp.stack(mats)


def _band_weights_hupsample(w_hwio, width_in, width_out):
    """'same' conv along W applied to a nearest-2x horizontally upsampled input
    that is stored at half resolution (width_in = width_out // 2)."""
    kh_n, kw_n, _, _ = w_hwio.shape
    pad = (kw_n - 1) // 2
    mats = []
    for kh in range(kh_n):
        acc = None
        for kw in range(kw_n):
            p = np.zeros((width_in, width_out), np.float32)
            for wo in range(width_out):
                wi = wo + kw - pad
                if 0 <= wi < width_out:
                    p[wi // 2, wo] = 1.0
            term = jnp.kron(jnp.asarray(p), w_hwio[kh, kw])
            acc = term if acc is None else acc + term
        mats.append(acc)
    return jnp.stack(mats)


def pack_params(params, H, W, paddings):
    """Convert PyTorch-style (OIHW, bias) params into kernel-ready operands."""
    (w1, b1), (w2, b2), (w3, b3), (w4, b4) = params
    for (w, _), p in zip(params, paddings):
        assert p == (w.shape[-1] - 1) // 2, "banded lowering assumes 'same' convs"
    to_hwio = lambda w: jnp.transpose(w, (2, 3, 1, 0))   # OIHW -> HWIO
    H2, Wh = H // 2, W // 2
    c2 = w2.shape[0]

    # Static selection / replication matrices (pool + nearest upsample).
    te = np.zeros((H2, H), np.float32)
    te[np.arange(H2), 2 * np.arange(H2)] = 1.0           # even rows
    to = np.zeros((H2, H), np.float32)
    to[np.arange(H2), 2 * np.arange(H2) + 1] = 1.0       # odd rows
    pe = np.zeros((W, Wh), np.float32)
    pe[2 * np.arange(Wh), np.arange(Wh)] = 1.0           # even columns
    po = np.zeros((W, Wh), np.float32)
    po[2 * np.arange(Wh) + 1, np.arange(Wh)] = 1.0       # odd columns
    eye_c2 = np.eye(c2, dtype=np.float32)
    ru = np.zeros((H, H2), np.float32)
    ru[np.arange(H), np.arange(H) // 2] = 1.0            # row replication (2x)

    return dict(
        w1k=_band_weights(to_hwio(w1), W),               # (3, W*C0, W*C1)
        b1t=jnp.tile(b1, W)[None, :],
        w2k=_band_weights(to_hwio(w2), W),               # (3, W*C1, W*C1)
        b2t=jnp.tile(b2, W)[None, :],
        te=jnp.asarray(te), to=jnp.asarray(to),
        se=jnp.asarray(np.kron(pe, eye_c2)),             # (W*C2, Wh*C2)
        so=jnp.asarray(np.kron(po, eye_c2)),
        w3k=_band_weights(to_hwio(w3), Wh),              # (3, Wh*C2, Wh*C3)
        b3t=jnp.tile(b3, Wh)[None, :],
        ru=jnp.asarray(ru),
        w4k=_band_weights_hupsample(to_hwio(w4), Wh, W), # (3, Wh*C3, W*C4)
        b4t=jnp.tile(b4, W)[None, :],
    )


# ----------------------------------------------------------------------------
# Wrapper
# ----------------------------------------------------------------------------
def fcnn_forward(packed, x_nchw):
    N, C0, H, W = x_nchw.shape
    H2 = H // 2
    x = jnp.transpose(x_nchw, (0, 2, 3, 1)).reshape(N, H, W * C0)

    L0 = W * C0
    L1 = packed["w1k"].shape[2]        # W * C1
    L2 = packed["w3k"].shape[1]        # (W//2) * C2
    L3 = packed["w3k"].shape[2]        # (W//2) * C3
    L4 = packed["w4k"].shape[2]        # W * C4
    C4 = L4 // W

    def full_spec(a):
        n = a.ndim
        return pl.BlockSpec(a.shape, lambda i: (0,) * n)

    order = ("w1k", "b1t", "w2k", "b2t", "te", "to", "se", "so",
             "w3k", "b3t", "ru", "w4k", "b4t")

    out = pl.pallas_call(
        _fcnn_kernel,
        out_shape=jax.ShapeDtypeStruct((N, H, L4), jnp.float32),
        grid=(N,),
        in_specs=[pl.BlockSpec((1, H, L0), lambda i: (i, 0, 0))]
                 + [full_spec(packed[k]) for k in order],
        out_specs=pl.BlockSpec((1, H, L4), lambda i: (i, 0, 0)),
        scratch_shapes=[
            pltpu.VMEM((H + 2, L0), jnp.float32),    # padded conv1 input
            pltpu.VMEM((H + 2, L1), jnp.float32),    # padded conv2 input
            pltpu.VMEM((H2 + 2, L2), jnp.float32),   # padded conv3 input (pooled)
            pltpu.VMEM((H + 2, L3), jnp.float32),    # padded conv4 input (upsampled)
        ],
        compiler_params=pltpu.CompilerParams(
            dimension_semantics=("parallel",)),
    )(x, *[packed[k] for k in order])

    return jnp.transpose(out.reshape(N, H, W, C4), (0, 3, 1, 2))   # -> NCHW


# ----------------------------------------------------------------------------
# Parameter init (deterministic, PyTorch-Conv2d-like uniform fan-in bounds)
# ----------------------------------------------------------------------------
def init_params(key, channels, kernels):
    params = []
    for i in range(4):
        key, kw_key, kb_key = jax.random.split(key, 3)
        cin, cout, k = channels[i], channels[i + 1], kernels[i]
        bound = 1.0 / float(np.sqrt(cin * k * k))
        w = jax.random.uniform(kw_key, (cout, cin, k, k), jnp.float32,
                               -bound, bound)           # PyTorch OIHW layout
        b = jax.random.uniform(kb_key, (cout,), jnp.float32, -bound, bound)
        params.append((w, b))
    return params


# Pure-JAX reference (mirrors the PyTorch module) for a correctness check.
def _reference_forward(params, x, paddings):
    def conv(h, w, b, p):
        y = jax.lax.conv_general_dilated(
            h, w, window_strides=(1, 1), padding=[(p, p), (p, p)],
            dimension_numbers=("NCHW", "OIHW", "NCHW"))
        return y + b[None, :, None, None]

    (w1, b1), (w2, b2), (w3, b3), (w4, b4) = params
    h = jax.nn.relu(conv(x, w1, b1, paddings[0]))
    h = jax.nn.relu(conv(h, w2, b2, paddings[1]))
    h = jax.lax.reduce_window(h, -jnp.inf, jax.lax.max,
                              (1, 1, 2, 2), (1, 1, 2, 2), "VALID")
    h = jax.nn.relu(conv(h, w3, b3, paddings[2]))
    h = jnp.repeat(jnp.repeat(h, 2, axis=2), 2, axis=3)   # nearest upsample 2x
    return jax.nn.sigmoid(conv(h, w4, b4, paddings[3]))


if __name__ == "__main__":
    channels = (4, 8, 8, 8, 4)
    kernels = (3, 3, 3, 3)
    paddings = (1, 1, 1, 1)

    key = jax.random.PRNGKey(0)
    kx, kp = jax.random.split(key)
    x = jax.random.normal(kx, (2, 4, 16, 16), jnp.float32)        # NCHW input
    params = init_params(kp, channels, kernels)
    packed = pack_params(params, H=16, W=16, paddings=paddings)   # one-time prep

    fwd = jax.jit(fcnn_forward)
    out = fwd(packed, x)
    jax.block_until_ready(out)

    assert out.shape == (2, 4, 16, 16), out.shape
    assert bool(jnp.all((out >= 0.0) & (out <= 1.0)))             # sigmoid range

    ref = _reference_forward(params, x, paddings)
    max_err = float(jnp.max(jnp.abs(out - ref)))
    assert bool(jnp.allclose(out, ref, atol=5e-3, rtol=0.0)), max_err
    print("KERNEL_OK")
</pallas_src>

<mosaic_0001>
module attributes {stable_mosaic.version = 11 : i64} {
  func.func @_fcnn_kernel(%arg0: i32, %arg1: memref<1x16x64xf32, #tpu.memory_space<vmem>>, %arg2: memref<3x64x128xf32, #tpu.memory_space<vmem>>, %arg3: memref<1x128xf32, #tpu.memory_space<vmem>>, %arg4: memref<3x128x128xf32, #tpu.memory_space<vmem>>, %arg5: memref<1x128xf32, #tpu.memory_space<vmem>>, %arg6: memref<8x16xf32, #tpu.memory_space<vmem>>, %arg7: memref<8x16xf32, #tpu.memory_space<vmem>>, %arg8: memref<128x64xf32, #tpu.memory_space<vmem>>, %arg9: memref<128x64xf32, #tpu.memory_space<vmem>>, %arg10: memref<3x64x64xf32, #tpu.memory_space<vmem>>, %arg11: memref<1x64xf32, #tpu.memory_space<vmem>>, %arg12: memref<16x8xf32, #tpu.memory_space<vmem>>, %arg13: memref<3x64x64xf32, #tpu.memory_space<vmem>>, %arg14: memref<1x64xf32, #tpu.memory_space<vmem>>, %arg15: memref<1x16x64xf32, #tpu.memory_space<vmem>>, %arg16: memref<18x64xf32, #tpu.memory_space<vmem>>, %arg17: memref<18x128xf32, #tpu.memory_space<vmem>>, %arg18: memref<10x64xf32, #tpu.memory_space<vmem>>, %arg19: memref<18x64xf32, #tpu.memory_space<vmem>>) attributes {dimension_semantics = [#tpu.dimension_semantics<parallel>], iteration_bounds = array<i64: 2>, scalar_prefetch = 0 : i64, scratch_operands = 4 : i64, tpu.core_type = #tpu.core_type<tc>, window_params = [{transform_indices = @transform_0, window_bounds = array<i64: 1, 16, 64>}, {pipeline_mode = #tpu.pipeline_mode<synchronous>, transform_indices = @transform_1, window_bounds = array<i64: 3, 64, 128>}, {pipeline_mode = #tpu.pipeline_mode<synchronous>, transform_indices = @transform_2, window_bounds = array<i64: 1, 128>}, {pipeline_mode = #tpu.pipeline_mode<synchronous>, transform_indices = @transform_3, window_bounds = array<i64: 3, 128, 128>}, {pipeline_mode = #tpu.pipeline_mode<synchronous>, transform_indices = @transform_4, window_bounds = array<i64: 1, 128>}, {pipeline_mode = #tpu.pipeline_mode<synchronous>, transform_indices = @transform_5, window_bounds = array<i64: 8, 16>}, {pipeline_mode = #tpu.pipeline_mode<synchronous>, transform_indices = @transform_6, window_bounds = array<i64: 8, 16>}, {pipeline_mode = #tpu.pipeline_mode<synchronous>, transform_indices = @transform_7, window_bounds = array<i64: 128, 64>}, {pipeline_mode = #tpu.pipeline_mode<synchronous>, transform_indices = @transform_8, window_bounds = array<i64: 128, 64>}, {pipeline_mode = #tpu.pipeline_mode<synchronous>, transform_indices = @transform_9, window_bounds = array<i64: 3, 64, 64>}, {pipeline_mode = #tpu.pipeline_mode<synchronous>, transform_indices = @transform_10, window_bounds = array<i64: 1, 64>}, {pipeline_mode = #tpu.pipeline_mode<synchronous>, transform_indices = @transform_11, window_bounds = array<i64: 16, 8>}, {pipeline_mode = #tpu.pipeline_mode<synchronous>, transform_indices = @transform_12, window_bounds = array<i64: 3, 64, 64>}, {pipeline_mode = #tpu.pipeline_mode<synchronous>, transform_indices = @transform_13, window_bounds = array<i64: 1, 64>}, {transform_indices = @transform_14, window_bounds = array<i64: 1, 16, 64>}]} {
    %c0 = arith.constant 0 : index
    %c0_0 = arith.constant 0 : index
    %c0_1 = arith.constant 0 : index
    %0 = vector.load %arg1[%c0, %c0_0, %c0_1] : memref<1x16x64xf32, #tpu.memory_space<vmem>>, vector<1x16x64xf32>
    %1 = vector.shape_cast %0 : vector<1x16x64xf32> to vector<16x64xf32>
    %cst = arith.constant 0.000000e+00 : f32
    %2 = vector.broadcast %cst : f32 to vector<18x64xf32>
    %c0_2 = arith.constant 0 : index
    %c0_3 = arith.constant 0 : index
    %3 = vector.load %arg16[%c0_2, %c0_3] : memref<18x64xf32, #tpu.memory_space<vmem>>, vector<18x64xf32>
    tpu.vector_store %arg16[%c0_2, %c0_3], %2 {strides = array<i32>} : memref<18x64xf32, #tpu.memory_space<vmem>>, vector<18x64xf32>,
    %c1 = arith.constant 1 : index
    %c0_4 = arith.constant 0 : index
    %4 = vector.load %arg16[%c1, %c0_4] : memref<18x64xf32, #tpu.memory_space<vmem>>, vector<16x64xf32>
    tpu.vector_store %arg16[%c1, %c0_4], %1 {strides = array<i32>} : memref<18x64xf32, #tpu.memory_space<vmem>>, vector<16x64xf32>,
    %cst_5 = arith.constant 0.000000e+00 : f32
    %5 = vector.broadcast %cst_5 : f32 to vector<16x128xf32>
    %c0_6 = arith.constant 0 : index
    %c0_7 = arith.constant 0 : index
    %6 = vector.load %arg16[%c0_6, %c0_7] : memref<18x64xf32, #tpu.memory_space<vmem>>, vector<16x64xf32>
    %c0_8 = arith.constant 0 : index
    %c0_9 = arith.constant 0 : index
    %c0_10 = arith.constant 0 : index
    %7 = vector.load %arg2[%c0_8, %c0_9, %c0_10] : memref<3x64x128xf32, #tpu.memory_space<vmem>>, vector<1x64x128xf32>
    %8 = vector.shape_cast %7 : vector<1x64x128xf32> to vector<64x128xf32>
    %cst_11 = arith.constant dense<0.000000e+00> : vector<16x128xf32>
    %9 = tpu.matmul %6, %8, %cst_11 {dimension_numbers = #tpu.dot_dimension_numbers<[1], [0], [0], [1], [0, 0, 1, 1], [], []>} : vector<16x64xf32>, vector<64x128xf32>, vector<16x128xf32> -> vector<16x128xf32>
    %10 = arith.addf %5, %9 : vector<16x128xf32>
    %c1_12 = arith.constant 1 : index
    %c0_13 = arith.constant 0 : index
    %11 = vector.load %arg16[%c1_12, %c0_13] : memref<18x64xf32, #tpu.memory_space<vmem>>, vector<16x64xf32>
    %c1_14 = arith.constant 1 : index
    %c0_15 = arith.constant 0 : index
    %c0_16 = arith.constant 0 : index
    %12 = vector.load %arg2[%c1_14, %c0_15, %c0_16] : memref<3x64x128xf32, #tpu.memory_space<vmem>>, vector<1x64x128xf32>
    %13 = vector.shape_cast %12 : vector<1x64x128xf32> to vector<64x128xf32>
    %cst_17 = arith.constant dense<0.000000e+00> : vector<16x128xf32>
    %14 = tpu.matmul %11, %13, %cst_17 {dimension_numbers = #tpu.dot_dimension_numbers<[1], [0], [0], [1], [0, 0, 1, 1], [], []>} : vector<16x64xf32>, vector<64x128xf32>, vector<16x128xf32> -> vector<16x128xf32>
    %15 = arith.addf %10, %14 : vector<16x128xf32>
    %c2 = arith.constant 2 : index
    %c0_18 = arith.constant 0 : index
    %16 = vector.load %arg16[%c2, %c0_18] : memref<18x64xf32, #tpu.memory_space<vmem>>, vector<16x64xf32>
    %c2_19 = arith.constant 2 : index
    %c0_20 = arith.constant 0 : index
    %c0_21 = arith.constant 0 : index
    %17 = vector.load %arg2[%c2_19, %c0_20, %c0_21] : memref<3x64x128xf32, #tpu.memory_space<vmem>>, vector<1x64x128xf32>
    %18 = vector.shape_cast %17 : vector<1x64x128xf32> to vector<64x128xf32>
    %cst_22 = arith.constant dense<0.000000e+00> : vector<16x128xf32>
    %19 = tpu.matmul %16, %18, %cst_22 {dimension_numbers = #tpu.dot_dimension_numbers<[1], [0], [0], [1], [0, 0, 1, 1], [], []>} : vector<16x64xf32>, vector<64x128xf32>, vector<16x128xf32> -> vector<16x128xf32>
    %20 = arith.addf %15, %19 : vector<16x128xf32>
    %c0_23 = arith.constant 0 : index
    %c0_24 = arith.constant 0 : index
    %21 = vector.load %arg3[%c0_23, %c0_24] : memref<1x128xf32, #tpu.memory_space<vmem>>, vector<1x128xf32>
    %22 = vector.broadcast %21 : vector<1x128xf32> to vector<16x128xf32>
    %23 = arith.addf %20, %22 : vector<16x128xf32>
    %cst_25 = arith.constant 0.000000e+00 : f32
    %24 = vector.broadcast %cst_25 : f32 to vector<16x128xf32>
    %25 = arith.maximumf %23, %24 : vector<16x128xf32>
    %cst_26 = arith.constant 0.000000e+00 : f32
    %26 = vector.broadcast %cst_26 : f32 to vector<18x128xf32>
    %c0_27 = arith.constant 0 : index
    %c0_28 = arith.constant 0 : index
    %27 = vector.load %arg17[%c0_27, %c0_28] : memref<18x128xf32, #tpu.memory_space<vmem>>, vector<18x128xf32>
    tpu.vector_store %arg17[%c0_27, %c0_28], %26 {strides = array<i32>} : memref<18x128xf32, #tpu.memory_space<vmem>>, vector<18x128xf32>,
    %c1_29 = arith.constant 1 : index
    %c0_30 = arith.constant 0 : index
    %28 = vector.load %arg17[%c1_29, %c0_30] : memref<18x128xf32, #tpu.memory_space<vmem>>, vector<16x128xf32>
    tpu.vector_store %arg17[%c1_29, %c0_30], %25 {strides = array<i32>} : memref<18x128xf32, #tpu.memory_space<vmem>>, vector<16x128xf32>,
    %cst_31 = arith.constant 0.000000e+00 : f32
    %29 = vector.broadcast %cst_31 : f32 to vector<16x128xf32>
    %c0_32 = arith.constant 0 : index
    %c0_33 = arith.constant 0 : index
    %30 = vector.load %arg17[%c0_32, %c0_33] : memref<18x128xf32, #tpu.memory_space<vmem>>, vector<16x128xf32>
    %c0_34 = arith.constant 0 : index
    %c0_35 = arith.constant 0 : index
    %c0_36 = arith.constant 0 : index
    %31 = vector.load %arg4[%c0_34, %c0_35, %c0_36] : memref<3x128x128xf32, #tpu.memory_space<vmem>>, vector<1x128x128xf32>
    %32 = vector.shape_cast %31 : vector<1x128x128xf32> to vector<128x128xf32>
    %cst_37 = arith.constant dense<0.000000e+00> : vector<16x128xf32>
    %33 = tpu.matmul %30, %32, %cst_37 {dimension_numbers = #tpu.dot_dimension_numbers<[1], [0], [0], [1], [0, 0, 1, 1], [], []>} : vector<16x128xf32>, vector<128x128xf32>, vector<16x128xf32> -> vector<16x128xf32>
    %34 = arith.addf %29, %33 : vector<16x128xf32>
    %c1_38 = arith.constant 1 : index
    %c0_39 = arith.constant 0 : index
    %35 = vector.load %arg17[%c1_38, %c0_39] : memref<18x128xf32, #tpu.memory_space<vmem>>, vector<16x128xf32>
    %c1_40 = arith.constant 1 : index
    %c0_41 = arith.constant 0 : index
    %c0_42 = arith.constant 0 : index
    %36 = vector.load %arg4[%c1_40, %c0_41, %c0_42] : memref<3x128x128xf32, #tpu.memory_space<vmem>>, vector<1x128x128xf32>
    %37 = vector.shape_cast %36 : vector<1x128x128xf32> to vector<128x128xf32>
    %cst_43 = arith.constant dense<0.000000e+00> : vector<16x128xf32>
    %38 = tpu.matmul %35, %37, %cst_43 {dimension_numbers = #tpu.dot_dimension_numbers<[1], [0], [0], [1], [0, 0, 1, 1], [], []>} : vector<16x128xf32>, vector<128x128xf32>, vector<16x128xf32> -> vector<16x128xf32>
    %39 = arith.addf %34, %38 : vector<16x128xf32>
    %c2_44 = arith.constant 2 : index
    %c0_45 = arith.constant 0 : index
    %40 = vector.load %arg17[%c2_44, %c0_45] : memref<18x128xf32, #tpu.memory_space<vmem>>, vector<16x128xf32>
    %c2_46 = arith.constant 2 : index
    %c0_47 = arith.constant 0 : index
    %c0_48 = arith.constant 0 : index
    %41 = vector.load %arg4[%c2_46, %c0_47, %c0_48] : memref<3x128x128xf32, #tpu.memory_space<vmem>>, vector<1x128x128xf32>
    %42 = vector.shape_cast %41 : vector<1x128x128xf32> to vector<128x128xf32>
    %cst_49 = arith.constant dense<0.000000e+00> : vector<16x128xf32>
    %43 = tpu.matmul %40, %42, %cst_49 {dimension_numbers = #tpu.dot_dimension_numbers<[1], [0], [0], [1], [0, 0, 1, 1], [], []>} : vector<16x128xf32>, vector<128x128xf32>, vector<16x128xf32> -> vector<16x128xf32>
    %44 = arith.addf %39, %43 : vector<16x128xf32>
    %c0_50 = arith.constant 0 : index
    %c0_51 = arith.constant 0 : index
    %45 = vector.load %arg5[%c0_50, %c0_51] : memref<1x128xf32, #tpu.memory_space<vmem>>, vector<1x128xf32>
    %46 = vector.broadcast %45 : vector<1x128xf32> to vector<16x128xf32>
    %47 = arith.addf %44, %46 : vector<16x128xf32>
    %cst_52 = arith.constant 0.000000e+00 : f32
    %48 = vector.broadcast %cst_52 : f32 to vector<16x128xf32>
    %49 = arith.maximumf %47, %48 : vector<16x128xf32>
    %c0_53 = arith.constant 0 : index
    %c0_54 = arith.constant 0 : index
    %50 = vector.load %arg6[%c0_53, %c0_54] : memref<8x16xf32, #tpu.memory_space<vmem>>, vector<8x16xf32>
    %cst_55 = arith.constant dense<0.000000e+00> : vector<8x128xf32>
    %51 = tpu.matmul %50, %49, %cst_55 {dimension_numbers = #tpu.dot_dimension_numbers<[1], [0], [0], [1], [0, 0, 1, 1], [], []>} : vector<8x16xf32>, vector<16x128xf32>, vector<8x128xf32> -> vector<8x128xf32>
    %c0_56 = arith.constant 0 : index
    %c0_57 = arith.constant 0 : index
    %52 = vector.load %arg7[%c0_56, %c0_57] : memref<8x16xf32, #tpu.memory_space<vmem>>, vector<8x16xf32>
    %cst_58 = arith.constant dense<0.000000e+00> : vector<8x128xf32>
    %53 = tpu.matmul %52, %49, %cst_58 {dimension_numbers = #tpu.dot_dimension_numbers<[1], [0], [0], [1], [0, 0, 1, 1], [], []>} : vector<8x16xf32>, vector<16x128xf32>, vector<8x128xf32> -> vector<8x128xf32>
    %54 = arith.maximumf %51, %53 : vector<8x128xf32>
    %c0_59 = arith.constant 0 : index
    %c0_60 = arith.constant 0 : index
    %55 = vector.load %arg8[%c0_59, %c0_60] : memref<128x64xf32, #tpu.memory_space<vmem>>, vector<128x64xf32>
    %cst_61 = arith.constant dense<0.000000e+00> : vector<8x64xf32>
    %56 = tpu.matmul %54, %55, %cst_61 {dimension_numbers = #tpu.dot_dimension_numbers<[1], [0], [0], [1], [0, 0, 1, 1], [], []>} : vector<8x128xf32>, vector<128x64xf32>, vector<8x64xf32> -> vector<8x64xf32>
    %c0_62 = arith.constant 0 : index
    %c0_63 = arith.constant 0 : index
    %57 = vector.load %arg9[%c0_62, %c0_63] : memref<128x64xf32, #tpu.memory_space<vmem>>, vector<128x64xf32>
    %cst_64 = arith.constant dense<0.000000e+00> : vector<8x64xf32>
    %58 = tpu.matmul %54, %57, %cst_64 {dimension_numbers = #tpu.dot_dimension_numbers<[1], [0], [0], [1], [0, 0, 1, 1], [], []>} : vector<8x128xf32>, vector<128x64xf32>, vector<8x64xf32> -> vector<8x64xf32>
    %59 = arith.maximumf %56, %58 : vector<8x64xf32>
    %cst_65 = arith.constant 0.000000e+00 : f32
    %60 = vector.broadcast %cst_65 : f32 to vector<10x64xf32>
    %c0_66 = arith.constant 0 : index
    %c0_67 = arith.constant 0 : index
    %61 = vector.load %arg18[%c0_66, %c0_67] : memref<10x64xf32, #tpu.memory_space<vmem>>, vector<10x64xf32>
    tpu.vector_store %arg18[%c0_66, %c0_67], %60 {strides = array<i32>} : memref<10x64xf32, #tpu.memory_space<vmem>>, vector<10x64xf32>,
    %c1_68 = arith.constant 1 : index
    %c0_69 = arith.constant 0 : index
    %62 = vector.load %arg18[%c1_68, %c0_69] : memref<10x64xf32, #tpu.memory_space<vmem>>, vector<8x64xf32>
    tpu.vector_store %arg18[%c1_68, %c0_69], %59 {strides = array<i32>} : memref<10x64xf32, #tpu.memory_space<vmem>>, vector<8x64xf32>,
    %cst_70 = arith.constant 0.000000e+00 : f32
    %63 = vector.broadcast %cst_70 : f32 to vector<8x64xf32>
    %c0_71 = arith.constant 0 : index
    %c0_72 = arith.constant 0 : index
    %64 = vector.load %arg18[%c0_71, %c0_72] : memref<10x64xf32, #tpu.memory_space<vmem>>, vector<8x64xf32>
    %c0_73 = arith.constant 0 : index
    %c0_74 = arith.constant 0 : index
    %c0_75 = arith.constant 0 : index
    %65 = vector.load %arg10[%c0_73, %c0_74, %c0_75] : memref<3x64x64xf32, #tpu.memory_space<vmem>>, vector<1x64x64xf32>
    %66 = vector.shape_cast %65 : vector<1x64x64xf32> to vector<64x64xf32>
    %cst_76 = arith.constant dense<0.000000e+00> : vector<8x64xf32>
    %67 = tpu.matmul %64, %66, %cst_76 {dimension_numbers = #tpu.dot_dimension_numbers<[1], [0], [0], [1], [0, 0, 1, 1], [], []>} : vector<8x64xf32>, vector<64x64xf32>, vector<8x64xf32> -> vector<8x64xf32>
    %68 = arith.addf %63, %67 : vector<8x64xf32>
    %c1_77 = arith.constant 1 : index
    %c0_78 = arith.constant 0 : index
    %69 = vector.load %arg18[%c1_77, %c0_78] : memref<10x64xf32, #tpu.memory_space<vmem>>, vector<8x64xf32>
    %c1_79 = arith.constant 1 : index
    %c0_80 = arith.constant 0 : index
    %c0_81 = arith.constant 0 : index
    %70 = vector.load %arg10[%c1_79, %c0_80, %c0_81] : memref<3x64x64xf32, #tpu.memory_space<vmem>>, vector<1x64x64xf32>
    %71 = vector.shape_cast %70 : vector<1x64x64xf32> to vector<64x64xf32>
    %cst_82 = arith.constant dense<0.000000e+00> : vector<8x64xf32>
    %72 = tpu.matmul %69, %71, %cst_82 {dimension_numbers = #tpu.dot_dimension_numbers<[1], [0], [0], [1], [0, 0, 1, 1], [], []>} : vector<8x64xf32>, vector<64x64xf32>, vector<8x64xf32> -> vector<8x64xf32>
    %73 = arith.addf %68, %72 : vector<8x64xf32>
    %c2_83 = arith.constant 2 : index
    %c0_84 = arith.constant 0 : index
    %74 = vector.load %arg18[%c2_83, %c0_84] : memref<10x64xf32, #tpu.memory_space<vmem>>, vector<8x64xf32>
    %c2_85 = arith.constant 2 : index
    %c0_86 = arith.constant 0 : index
    %c0_87 = arith.constant 0 : index
    %75 = vector.load %arg10[%c2_85, %c0_86, %c0_87] : memref<3x64x64xf32, #tpu.memory_space<vmem>>, vector<1x64x64xf32>
    %76 = vector.shape_cast %75 : vector<1x64x64xf32> to vector<64x64xf32>
    %cst_88 = arith.constant dense<0.000000e+00> : vector<8x64xf32>
    %77 = tpu.matmul %74, %76, %cst_88 {dimension_numbers = #tpu.dot_dimension_numbers<[1], [0], [0], [1], [0, 0, 1, 1], [], []>} : vector<8x64xf32>, vector<64x64xf32>, vector<8x64xf32> -> vector<8x64xf32>
    %78 = arith.addf %73, %77 : vector<8x64xf32>
    %c0_89 = arith.constant 0 : index
    %c0_90 = arith.constant 0 : index
    %79 = vector.load %arg11[%c0_89, %c0_90] : memref<1x64xf32, #tpu.memory_space<vmem>>, vector<1x64xf32>
    %80 = vector.broadcast %79 : vector<1x64xf32> to vector<8x64xf32>
    %81 = arith.addf %78, %80 : vector<8x64xf32>
    %cst_91 = arith.constant 0.000000e+00 : f32
    %82 = vector.broadcast %cst_91 : f32 to vector<8x64xf32>
    %83 = arith.maximumf %81, %82 : vector<8x64xf32>
    %c0_92 = arith.constant 0 : index
    %c0_93 = arith.constant 0 : index
    %84 = vector.load %arg12[%c0_92, %c0_93] : memref<16x8xf32, #tpu.memory_space<vmem>>, vector<16x8xf32>
    %cst_94 = arith.constant dense<0.000000e+00> : vector<16x64xf32>
    %85 = tpu.matmul %84, %83, %cst_94 {dimension_numbers = #tpu.dot_dimension_numbers<[1], [0], [0], [1], [0, 0, 1, 1], [], []>} : vector<16x8xf32>, vector<8x64xf32>, vector<16x64xf32> -> vector<16x64xf32>
    %cst_95 = arith.constant 0.000000e+00 : f32
    %86 = vector.broadcast %cst_95 : f32 to vector<18x64xf32>
    %c0_96 = arith.constant 0 : index
    %c0_97 = arith.constant 0 : index
    %87 = vector.load %arg19[%c0_96, %c0_97] : memref<18x64xf32, #tpu.memory_space<vmem>>, vector<18x64xf32>
    tpu.vector_store %arg19[%c0_96, %c0_97], %86 {strides = array<i32>} : memref<18x64xf32, #tpu.memory_space<vmem>>, vector<18x64xf32>,
    %c1_98 = arith.constant 1 : index
    %c0_99 = arith.constant 0 : index
    %88 = vector.load %arg19[%c1_98, %c0_99] : memref<18x64xf32, #tpu.memory_space<vmem>>, vector<16x64xf32>
    tpu.vector_store %arg19[%c1_98, %c0_99], %85 {strides = array<i32>} : memref<18x64xf32, #tpu.memory_space<vmem>>, vector<16x64xf32>,
    %cst_100 = arith.constant 0.000000e+00 : f32
    %89 = vector.broadcast %cst_100 : f32 to vector<16x64xf32>
    %c0_101 = arith.constant 0 : index
    %c0_102 = arith.constant 0 : index
    %90 = vector.load %arg19[%c0_101, %c0_102] : memref<18x64xf32, #tpu.memory_space<vmem>>, vector<16x64xf32>
    %c0_103 = arith.constant 0 : index
    %c0_104 = arith.constant 0 : index
    %c0_105 = arith.constant 0 : index
    %91 = vector.load %arg13[%c0_103, %c0_104, %c0_105] : memref<3x64x64xf32, #tpu.memory_space<vmem>>, vector<1x64x64xf32>
    %92 = vector.shape_cast %91 : vector<1x64x64xf32> to vector<64x64xf32>
    %cst_106 = arith.constant dense<0.000000e+00> : vector<16x64xf32>
    %93 = tpu.matmul %90, %92, %cst_106 {dimension_numbers = #tpu.dot_dimension_numbers<[1], [0], [0], [1], [0, 0, 1, 1], [], []>} : vector<16x64xf32>, vector<64x64xf32>, vector<16x64xf32> -> vector<16x64xf32>
    %94 = arith.addf %89, %93 : vector<16x64xf32>
    %c1_107 = arith.constant 1 : index
    %c0_108 = arith.constant 0 : index
    %95 = vector.load %arg19[%c1_107, %c0_108] : memref<18x64xf32, #tpu.memory_space<vmem>>, vector<16x64xf32>
    %c1_109 = arith.constant 1 : index
    %c0_110 = arith.constant 0 : index
    %c0_111 = arith.constant 0 : index
    %96 = vector.load %arg13[%c1_109, %c0_110, %c0_111] : memref<3x64x64xf32, #tpu.memory_space<vmem>>, vector<1x64x64xf32>
    %97 = vector.shape_cast %96 : vector<1x64x64xf32> to vector<64x64xf32>
    %cst_112 = arith.constant dense<0.000000e+00> : vector<16x64xf32>
    %98 = tpu.matmul %95, %97, %cst_112 {dimension_numbers = #tpu.dot_dimension_numbers<[1], [0], [0], [1], [0, 0, 1, 1], [], []>} : vector<16x64xf32>, vector<64x64xf32>, vector<16x64xf32> -> vector<16x64xf32>
    %99 = arith.addf %94, %98 : vector<16x64xf32>
    %c2_113 = arith.constant 2 : index
    %c0_114 = arith.constant 0 : index
    %100 = vector.load %arg19[%c2_113, %c0_114] : memref<18x64xf32, #tpu.memory_space<vmem>>, vector<16x64xf32>
    %c2_115 = arith.constant 2 : index
    %c0_116 = arith.constant 0 : index
    %c0_117 = arith.constant 0 : index
    %101 = vector.load %arg13[%c2_115, %c0_116, %c0_117] : memref<3x64x64xf32, #tpu.memory_space<vmem>>, vector<1x64x64xf32>
    %102 = vector.shape_cast %101 : vector<1x64x64xf32> to vector<64x64xf32>
    %cst_118 = arith.constant dense<0.000000e+00> : vector<16x64xf32>
    %103 = tpu.matmul %100, %102, %cst_118 {dimension_numbers = #tpu.dot_dimension_numbers<[1], [0], [0], [1], [0, 0, 1, 1], [], []>} : vector<16x64xf32>, vector<64x64xf32>, vector<16x64xf32> -> vector<16x64xf32>
    %104 = arith.addf %99, %103 : vector<16x64xf32>
    %c0_119 = arith.constant 0 : index
    %c0_120 = arith.constant 0 : index
    %105 = vector.load %arg14[%c0_119, %c0_120] : memref<1x64xf32, #tpu.memory_space<vmem>>, vector<1x64xf32>
    %106 = vector.broadcast %105 : vector<1x64xf32> to vector<16x64xf32>
    %107 = arith.addf %104, %106 : vector<16x64xf32>
    %108 = arith.negf %107 : vector<16x64xf32>
    %109 = math.exp %108 : vector<16x64xf32>
    %cst_121 = arith.constant 1.000000e+00 : f32
    %110 = vector.broadcast %cst_121 : f32 to vector<16x64xf32>
    %111 = arith.addf %110, %109 : vector<16x64xf32>
    %112 = arith.divf %110, %111 : vector<16x64xf32>
    %c0_122 = arith.constant 0 : index
    %c0_123 = arith.constant 0 : index
    %c0_124 = arith.constant 0 : index
    %113 = vector.load %arg15[%c0_122, %c0_123, %c0_124] : memref<1x16x64xf32, #tpu.memory_space<vmem>>, vector<1x16x64xf32>
    %114 = vector.shape_cast %113 : vector<1x16x64xf32> to vector<16x64xf32>
    %115 = vector.shape_cast %112 : vector<16x64xf32> to vector<1x16x64xf32>
    tpu.vector_store %arg15[%c0_122, %c0_123, %c0_124], %115 {strides = array<i32>} : memref<1x16x64xf32, #tpu.memory_space<vmem>>, vector<1x16x64xf32>,
    return
  }
  func.func @transform_0(%arg0: i32) -> (i32, i32, i32) {
    %c0_i32 = arith.constant 0 : i32
    %c0_i32_0 = arith.constant 0 : i32
    %c0_i32_1 = arith.constant 0 : i32
    return %arg0, %c0_i32, %c0_i32_0 : i32, i32, i32
  }
  func.func @transform_1(%arg0: i32) -> (i32, i32, i32) {
    %c0_i32 = arith.constant 0 : i32
    %c0_i32_0 = arith.constant 0 : i32
    %c0_i32_1 = arith.constant 0 : i32
    %c0_i32_2 = arith.constant 0 : i32
    return %c0_i32, %c0_i32_0, %c0_i32_1 : i32, i32, i32
  }
  func.func @transform_2(%arg0: i32) -> (i32, i32) {
    %c0_i32 = arith.constant 0 : i32
    %c0_i32_0 = arith.constant 0 : i32
    %c0_i32_1 = arith.constant 0 : i32
    return %c0_i32, %c0_i32_0 : i32, i32
  }
  func.func @transform_3(%arg0: i32) -> (i32, i32, i32) {
    %c0_i32 = arith.constant 0 : i32
    %c0_i32_0 = arith.constant 0 : i32
    %c0_i32_1 = arith.constant 0 : i32
    %c0_i32_2 = arith.constant 0 : i32
    return %c0_i32, %c0_i32_0, %c0_i32_1 : i32, i32, i32
  }
  func.func @transform_4(%arg0: i32) -> (i32, i32) {
    %c0_i32 = arith.constant 0 : i32
    %c0_i32_0 = arith.constant 0 : i32
    %c0_i32_1 = arith.constant 0 : i32
    return %c0_i32, %c0_i32_0 : i32, i32
  }
  func.func @transform_5(%arg0: i32) -> (i32, i32) {
    %c0_i32 = arith.constant 0 : i32
    %c0_i32_0 = arith.constant 0 : i32
    %c0_i32_1 = arith.constant 0 : i32
    return %c0_i32, %c0_i32_0 : i32, i32
  }
  func.func @transform_6(%arg0: i32) -> (i32, i32) {
    %c0_i32 = arith.constant 0 : i32
    %c0_i32_0 = arith.constant 0 : i32
    %c0_i32_1 = arith.constant 0 : i32
    return %c0_i32, %c0_i32_0 : i32, i32
  }
  func.func @transform_7(%arg0: i32) -> (i32, i32) {
    %c0_i32 = arith.constant 0 : i32
    %c0_i32_0 = arith.constant 0 : i32
    %c0_i32_1 = arith.constant 0 : i32
    return %c0_i32, %c0_i32_0 : i32, i32
  }
  func.func @transform_8(%arg0: i32) -> (i32, i32) {
    %c0_i32 = arith.constant 0 : i32
    %c0_i32_0 = arith.constant 0 : i32
    %c0_i32_1 = arith.constant 0 : i32
    return %c0_i32, %c0_i32_0 : i32, i32
  }
  func.func @transform_9(%arg0: i32) -> (i32, i32, i32) {
    %c0_i32 = arith.constant 0 : i32
    %c0_i32_0 = arith.constant 0 : i32
    %c0_i32_1 = arith.constant 0 : i32
    %c0_i32_2 = arith.constant 0 : i32
    return %c0_i32, %c0_i32_0, %c0_i32_1 : i32, i32, i32
  }
  func.func @transform_10(%arg0: i32) -> (i32, i32) {
    %c0_i32 = arith.constant 0 : i32
    %c0_i32_0 = arith.constant 0 : i32
    %c0_i32_1 = arith.constant 0 : i32
    return %c0_i32, %c0_i32_0 : i32, i32
  }
  func.func @transform_11(%arg0: i32) -> (i32, i32) {
    %c0_i32 = arith.constant 0 : i32
    %c0_i32_0 = arith.constant 0 : i32
    %c0_i32_1 = arith.constant 0 : i32
    return %c0_i32, %c0_i32_0 : i32, i32
  }
  func.func @transform_12(%arg0: i32) -> (i32, i32, i32) {
    %c0_i32 = arith.constant 0 : i32
    %c0_i32_0 = arith.constant 0 : i32
    %c0_i32_1 = arith.constant 0 : i32
    %c0_i32_2 = arith.constant 0 : i32
    return %c0_i32, %c0_i32_0, %c0_i32_1 : i32, i32, i32
  }
  func.func @transform_13(%arg0: i32) -> (i32, i32) {
    %c0_i32 = arith.constant 0 : i32
    %c0_i32_0 = arith.constant 0 : i32
    %c0_i32_1 = arith.constant 0 : i32
    return %c0_i32, %c0_i32_0 : i32, i32
  }
  func.func @transform_14(%arg0: i32) -> (i32, i32, i32) {
    %c0_i32 = arith.constant 0 : i32
    %c0_i32_0 = arith.constant 0 : i32
    %c0_i32_1 = arith.constant 0 : i32
    return %arg0, %c0_i32, %c0_i32_0 : i32, i32, i32
  }
}

</mosaic_0001>

<bundles_post_ra>
// kernel: fcnn_forward.1
= control target key start
LH: loop header
LB: loop body
LE: loop exit
PB: predicated region body
PF: predicated region fallthrough
CT: control target
= control target key end

     0   :  { %s4060_s0 = inlined_call_operand.vmem [shape: f32[2,16,64], index: 0, kind: input, shape index: {}]   ;;  %s4061_s1 = inlined_call_operand.vmem [shape: f32[3,64,128], index: 1, kind: input, shape index: {}]   ;;  %s4062_s2 = inlined_call_operand.vmem [shape: f32[1,128], index: 2, kind: input, shape index: {}]   ;;  %s4063_s3 = inlined_call_operand.vmem [shape: f32[3,128,128], index: 3, kind: input, shape index: {}]   ;;  %s4064_s4 = inlined_call_operand.vmem [shape: f32[1,128], index: 4, kind: input, shape index: {}]   ;;  %s4065_s5 = inlined_call_operand.vmem [shape: f32[8,16], index: 5, kind: input, shape index: {}]   ;;  %s4066_s6 = inlined_call_operand.hbm [shape: f32[8,16], index: 6, kind: input, shape index: {}]   ;;  %s4067_s7 = inlined_call_operand.vmem [shape: f32[128,64], index: 7, kind: input, shape index: {}]   ;;  %s4068_s8 = inlined_call_operand.vmem [shape: f32[128,64], index: 8, kind: input, shape index: {}]   ;;  %s4069_s9 = inlined_call_operand.vmem [shape: f32[3,64,64], index: 9, kind: input, shape index: {}]   ;;  %s4070_s10 = inlined_call_operand.hbm [shape: f32[1,64], index: 10, kind: input, shape index: {}]   ;;  %s4071_s11 = inlined_call_operand.vmem [shape: f32[16,8], index: 11, kind: input, shape index: {}]   ;;  %s4072_s12 = inlined_call_operand.hbm [shape: f32[3,64,64], index: 12, kind: input, shape index: {}]   ;;  %s4073_s13 = inlined_call_operand.hbm [shape: f32[1,64], index: 13, kind: input, shape index: {}]   ;;  %s4074_s14 = inlined_call_operand.vmem [shape: f32[2,16,64], index: 14, kind: output, shape index: {}]  }
   0x1   :  { %4078 = sst [smem:[#allocation17_spill]] %s4074_s14 }
   0x2   :  { %19 = vsyncpa [#allocation7], 0 }
   0x3   :  { %20 = vsyncpa [#allocation9], 0 }
   0x4   :  { %21 = vsyncpa [#allocation12], 0  ;;  %s3417_s29 = smov 0  }
   0x5 LB: > { %4079 = sst [smem:[#allocation16_spill]] %s3331_s29  ;;  %s3333_s30 = smov [#allocation8]   ;;  %s3331_s29 = sphi %s3417_s29, %s27_s29  }
   0x6   : > { %s405_s15 = sshll.u32 %s3333_s30, 4  ;;  %s3423_s16 = sadd.s32 4294967295, %s3331_s29   ;;  %s3428_s15 = int_to_ptr.vmem [resolvable:$true] %s405_s15 }
   0x7   : > { %p2188_p0 = scmp.ge.s32.totalorder %s3331_s29, 1  ;;  %p357_p1 = scmp.lt.s32.totalorder %s3331_s29, 3 }
   0x8   : > { %p4076_p2 = scmp.eq.s32.totalorder %s3423_s16, 0  ;;  %s3334_s18 = smov [#allocation6]  }
   0x9   : > { %p3430_p3 = pnand %p2188_p0, %p357_p1  ;;  %s385_s19 = sshll.u32 %s3334_s18, 4  ;;  %s3436_s19 = int_to_ptr.vmem [resolvable:$true] %s385_s19 }
   0xa   : > { %s3335_s20 = smov [#allocation10]   ;;  %s3336_s23 = smov [#allocation11]  }
   0xb   : > { %s4080_s17 = scalar_select %p3430_p3, 1, 0 }
   0xc   : > { %p3155_p4 = pneg %p3430_p3  ;;  %s418_s21 = sshll.u32 %s3335_s20, 4  ;;  %s3444_s21 = int_to_ptr.vmem [resolvable:$true] %s418_s21 }
   0xd   : > { %s3446_s24 = sshll.u32 %s3336_s23, 4  ;;  %s3201_s27 = scalar_lea.hbm %s4070_s10, 16  ;;  %s433_s24 = int_to_ptr.vmem [resolvable:$true] %s3446_s24 }
   0xe   : > { %p3440_p5 = pnand %p4076_p2, %p3155_p4  ;;  %p3202_p6 = scmp.ne.s32.totalorder %s4070_s10, %s3201_s27 }
   0xf   : > { %p3208_p10 = scmp.lt.u32.totalorder %s3201_s27, %s4070_s10 }
  0x10   : > { %p3456_p7 = pneg %p3440_p5 }
  0x12   : > { %p3204_p8 = pnand %p3456_p7, %p3202_p6 }
  0x14   : > { %p3205_p9 = pneg %p3204_p8 }
  0x16   : > { %p3210_p11 = pnand %p3208_p10, %p3205_p9 }
  0x18   : > { %3213 = shalt.err (!%p3210_p11)
}
  0x19   : > { %s3214_s25 = scalar_lea.vmem %s3428_s15, 16  ;;  %s3221_s26 = scalar_lea.vmem %s3428_s15, 32 }
  0x1a   : > { %p3215_p12 = scmp.ne.s32.totalorder %s3428_s15, %s3214_s25  ;;  %p3222_p1 = scmp.lt.s32.totalorder %s3428_s15, %s3428_s15 }
  0x1b   : > { %p3223_p4 = scmp.lt.s32.totalorder %s3221_s26, %s3214_s25 }
  0x1c   : > { %p3217_p13 = pnand %p3215_p12, %p3456_p7 }
  0x1d   : > { %p3224_p6 = por %p3223_p4, %p3222_p1 }
  0x1e   : > { %p3218_p0 = pneg %p3217_p13 }
  0x20   : > { %p3225_p8 = pnand %p3224_p6, %p3218_p0 }
  0x22   : > { %3228 = shalt.err (!%p3225_p8)
}
  0x23   : > { %3161 = dma.hbm_to_vmem [thread:$0]  (!%p3440_p5), %s4070_s10, 16, %s3428_s15, [#allocation9]  }
  0x24   : > { %s3229_s23 = scalar_lea.hbm %s4066_s6, 128 }
  0x25   : > { %p3230_p9 = scmp.ne.s32.totalorder %s4066_s6, %s3229_s23  ;;  %p3236_p12 = scmp.lt.u32.totalorder %s3229_s23, %s4066_s6 }
  0x27   : > { %p3232_p10 = pnand %p3230_p9, %p3456_p7 }
  0x29   : > { %p3233_p11 = pneg %p3232_p10 }
  0x2b   : > { %p3238_p13 = pnand %p3236_p12, %p3233_p11 }
  0x2d   : > { %3241 = shalt.err (!%p3238_p13)
}
  0x2e   : > { %s3242_s15 = scalar_lea.vmem %s3436_s19, 128  ;;  %p3250_p6 = scmp.lt.s32.totalorder %s3436_s19, %s3436_s19 }
  0x2f   : > { %p3243_p0 = scmp.ne.s32.totalorder %s3436_s19, %s3242_s15  ;;  %p3251_p8 = scmp.lt.s32.totalorder %s3242_s15, %s3242_s15 }
  0x31   : > { %p3245_p1 = pnand %p3243_p0, %p3456_p7  ;;  %p3252_p9 = por %p3251_p8, %p3250_p6 }
  0x33   : > { %p3246_p4 = pneg %p3245_p1 }
  0x35   : > { %p3253_p10 = pnand %p3252_p9, %p3246_p4 }
  0x37   : > { %3256 = shalt.err (!%p3253_p10)
}
  0x38   : > { %3158 = dma.hbm_to_vmem [thread:$0]  (!%p3440_p5), %s4066_s6, 128, %s3436_s19, [#allocation7]  }
  0x39   : > { %s3257_s30 = scalar_lea.hbm %s4072_s12, 3072 }
  0x3a   : > { %p3258_p11 = scmp.ne.s32.totalorder %s4072_s12, %s3257_s30  ;;  %p3264_p0 = scmp.lt.u32.totalorder %s3257_s30, %s4072_s12 }
  0x3c   : > { %p3260_p12 = pnand %p3258_p11, %p3456_p7 }
  0x3e   : > { %p3261_p13 = pneg %p3260_p12 }
  0x40   : > { %p3266_p1 = pnand %p3264_p0, %p3261_p13 }
  0x42   : > { %3269 = shalt.err (!%p3266_p1)
}
  0x43   : > { %s3270_s19 = scalar_lea.vmem %s3444_s21, 3072  ;;  %p3278_p9 = scmp.lt.s32.totalorder %s3444_s21, %s3444_s21 }
  0x44   : > { %p3271_p4 = scmp.ne.s32.totalorder %s3444_s21, %s3270_s19  ;;  %p3279_p10 = scmp.lt.s32.totalorder %s3270_s19, %s3270_s19 }
  0x46   : > { %p3273_p6 = pnand %p3271_p4, %p3456_p7  ;;  %p3280_p11 = por %p3279_p10, %p3278_p9 }
  0x48   : > { %p3274_p8 = pneg %p3273_p6 }
  0x4a   : > { %p3281_p12 = pnand %p3280_p11, %p3274_p8 }
  0x4c   : > { %3284 = shalt.err (!%p3281_p12)
}
  0x4d   : > { %s3337_s15 = smov 128   ;;  %s3338_s14 = smov 8  }
  0x4e   : > { %3164 = dma.hbm_to_vmem [thread:$0]  (!%p3440_p5), %s4072_s12, 3072, %s3444_s21, [#allocation9], %s3337_s15, %s3337_s15, %s3338_s14  }
  0x4f   : > { %s3285_s20 = scalar_lea.hbm %s4073_s13, 16 }
  0x50   : > { %p3286_p13 = scmp.ne.s32.totalorder %s4073_s13, %s3285_s20  ;;  %p3292_p4 = scmp.lt.u32.totalorder %s3285_s20, %s4073_s13 }
  0x52   : > { %p3288_p0 = pnand %p3286_p13, %p3456_p7 }
  0x54   : > { %p3289_p1 = pneg %p3288_p0 }
  0x56   : > { %p3294_p6 = pnand %p3292_p4, %p3289_p1 }
  0x58   : > { %3297 = shalt.err (!%p3294_p6)
}
  0x59   : > { %s3298_s29 = scalar_lea.vmem %s433_s24, 16  ;;  %s3305_s21 = scalar_lea.vmem %s433_s24, 32 }
  0x5a   : > { %p3299_p8 = scmp.ne.s32.totalorder %s433_s24, %s3298_s29  ;;  %p3306_p11 = scmp.lt.s32.totalorder %s433_s24, %s433_s24 }
  0x5b   : > { %p3307_p12 = scmp.lt.s32.totalorder %s3305_s21, %s3298_s29 }
  0x5c   : > { %p3301_p9 = pnand %p3299_p8, %p3456_p7 }
  0x5d   : > { %p3308_p2 = por %p3307_p12, %p3306_p11 }
  0x5e   : > { %p3302_p10 = pneg %p3301_p9 }
  0x60   : > { %p3309_p3 = pnand %p3308_p2, %p3302_p10 }
  0x62   : > { %3312 = shalt.err (!%p3309_p3)
}
  0x63   : > { %3167 = dma.hbm_to_vmem [thread:$0]  (!%p3440_p5), %s4073_s13, 16, %s433_s24, [#allocation12]  }
  0x64   : > { %p4083_p13 = scmp.ne.s32.totalorder %s4080_s17, 0 }
  0x65   : > { %p4084_p0 = scmp.eq.s32.totalorder (!%p4083_p13), %s3423_s16, 0 }
  0x66   : > { %453 = sbr.rel (%p4083_p13) target bundleno = 1875 (0x753), region = 76 }
  0x6d   : > { %3318 = dma.done.wait (%p4084_p0), [#allocation7], 128   ;;  %p4085_p7 = pmov %p4084_p0 }
  0x6e   : > { %p4086_p1 = pmov %p4084_p0 }
  0x6f   : > { %3320 = vsyncadd (%p4085_p7), [#allocation7], 4294967168 }
  0x70   : > { %3322 = dma.done.wait (%p4086_p1), [#allocation9], 3088   ;;  %p4087_p2 = pmov %p4084_p0 }
  0x71   : > { %p4088_p3 = pmov %p4084_p0 }
  0x72   : > { %3324 = vsyncadd (%p4087_p2), [#allocation9], 4294964208 }
  0x73   : > { %3326 = dma.done.wait (%p4088_p3), [#allocation12], 16   ;;  %p4089_p5 = pmov %p4084_p0 }
  0x74   : > { %p511_p4 = scmp.lt.s32.totalorder %s3423_s16, 1  ;;  %vm523_vm0 = vcmask 523264   ;;  %vm526_vm1 = vcmask 517120   ;;  %v3339_v0 = vmov 0.0   ;;  %v2203_v1 = vld [vmem:[%s4061_s1 + $0x40] sm:$0xff]  ;;  %v2204_v2 = vld [vmem:[%s4061_s1 + $0x48] sm:$0xff] }
  0x75   : > { %3328 = vsyncadd (%p4089_p5), [#allocation12], 4294967280  ;;  %524 = vst.msk [vmem:[#allocation2] sm:$0xff] %vm523_vm0, %v3339_v0  ;;  %v2205_v3 = vld [vmem:[%s4061_s1 + $0x50] sm:$0xff]  ;;  %v2845_v4 = vpack.c.bf16 %v2204_v2, %v2203_v1  ;;  %v2206_v5 = vld [vmem:[%s4061_s1 + $0x58] sm:$0xff]  ;;  %vm3341_vm2 = vmmov 0  }
  0x76   : > { %525 = vst.msk [vmem:[#allocation2 + $0x8] sm:$0xff] %vm523_vm0, %v3339_v0  ;;  %818 = vst [vmem:[#allocation3] sm:$0xff] %v3339_v0  ;;  %s4093_s16 = smov (!%p511_p4, %s3423_s16), 1  ;;  %v2849_v6 = vpack.c.bf16 %v2206_v5, %v2205_v3  ;;  %v2207_v7 = vld [vmem:[%s4061_s1 + $0x60] sm:$0xff]  ;;  %v2208_v8 = vld [vmem:[%s4061_s1 + $0x68] sm:$0xff]  ;;  %vm1118_vm3 = vcmask 130048  }
  0x77   : > { %819 = vst [vmem:[#allocation3 + $0x8] sm:$0xff] %v3339_v0  ;;  %820 = vst [vmem:[#allocation3 + $0x10] sm:$0x3] %v3339_v0  ;;  %s2294_s17 = sshll.u32 %s4093_s16, 4  ;;  %2846 = vmatprep.subr.bf16.mxu0 %v2845_v4  ;;  %v2853_v11 = vpack.c.bf16 %v2208_v8, %v2207_v7  ;;  %v2209_v12 = vld [vmem:[%s4061_s1 + $0x70] sm:$0xff]  ;;  %v2210_v13 = vld [vmem:[%s4061_s1 + $0x78] sm:$0xff] }
  0x78   : > { %1440 = vst.msk [vmem:[#allocation4] sm:$0xff] %vm523_vm0, %v3339_v0  ;;  %1785 = vst.msk [vmem:[#allocation5] sm:$0xff] %vm523_vm0, %v3339_v0  ;;  %s515_s18 = scalar_lea.vmem %s4060_s0, %s2294_s17  ;;  %2848 = vmatpush3.bf16.msra.mxu0 %v2845_v4  ;;  %v2226_v14 = vld [vmem:[%s4063_s3 + $0x80] sm:$0xff]  ;;  %v2857_v15 = vpack.c.bf16 %v2210_v13, %v2209_v12  ;;  %v2227_v16 = vld [vmem:[%s4063_s3 + $0x88] sm:$0xff]  ;;  %vm1703_vm4 = vcmask 64512   ;;  %s4090_s24 = sld [smem:[#allocation17_spill]] }
  0x79   : > { %1786 = vst.msk [vmem:[#allocation5 + $0x8] sm:$0xff] %vm523_vm0, %v3339_v0  ;;  %v521_v9 = vld [vmem:[%s515_s18] sm:$0xff]  ;;  %v522_v10 = vld [vmem:[%s515_s18 + $0x8] sm:$0xff]  ;;  %2850 = vmatprep.subr.bf16.mxu0 %v2849_v6  ;;  %v2228_v17 = vld [vmem:[%s4063_s3 + $0x90] sm:$0xff]  ;;  %v2893_v22 = vpack.c.bf16 %v2227_v16, %v2226_v14 }
  0x7a   : > { %527 = vst.msk [vmem:[#allocation2 + $0x10] sm:$0x3] %vm526_vm1, %v3339_v0  ;;  %1441 = vst.msk [vmem:[#allocation4 + $0x8] sm:$0x3] %vm526_vm1, %v3339_v0  ;;  %v2229_v18 = vld [vmem:[%s4063_s3 + $0x98] sm:$0xff]  ;;  %v532_v20 = vld [vmem:[%s4061_s1] sm:$0xff] }
  0x7b   : > { %1787 = vst.msk [vmem:[#allocation5 + $0x10] sm:$0x3] %vm526_vm1, %v3339_v0  ;;  %v533_v21 = vld [vmem:[%s4061_s1 + $0x8] sm:$0xff]  ;;  %v2897_v23 = vpack.c.bf16 %v2229_v18, %v2228_v17  ;;  %v2230_v24 = vld [vmem:[%s4063_s3 + $0xa0] sm:$0xff]  ;;  %2894 = vmatprep.subr.bf16.mxu1 %v2893_v22  ;;  %v534_v27 = vld [vmem:[%s4061_s1 + $0x10] sm:$0xff] }
  0x7c   : > { %528 = vst.msk [vmem:[#allocation2 + $0x1] sm:$0xff] %vm523_vm0, %v521_v9  ;;  %529 = vst.msk [vmem:[#allocation2 + $0x9] sm:$0xff] %vm523_vm0, %v522_v10  ;;  %2852 = vmatpush3.bf16.msra.mxu0 %v2849_v6  ;;  %v2231_v25 = vld [vmem:[%s4063_s3 + $0xa8] sm:$0xff]  ;;  %v2861_v26 = vpack.c.bf16 %v533_v21, %v532_v20  ;;  %2896 = vmatpush3.bf16.msra.mxu1 %v2893_v22  ;;  %v535_v28 = vld [vmem:[%s4061_s1 + $0x18] sm:$0xff] }
  0x7d   : > { %2854 = vmatprep.subr.bf16.mxu0 %v2853_v11  ;;  %2898 = vmatprep.subr.bf16.mxu1 %v2897_v23  ;;  %v2901_v29 = vpack.c.bf16 %v2231_v25, %v2230_v24  ;;  %v2232_v30 = vld [vmem:[%s4063_s3 + $0xb0] sm:$0xff]  ;;  %v2233_v31 = vld [vmem:[%s4063_s3 + $0xb8] sm:$0xff]  ;;  %v2865_v33 = vpack.c.bf16 %v535_v28, %v534_v27  ;;  %v536_v35 = vld [vmem:[%s4061_s1 + $0x20] sm:$0xff] }
  0x7e   : > { %v537_v36 = vld [vmem:[%s4061_s1 + $0x28] sm:$0xff]  ;;  %v2905_v37 = vpack.c.bf16 %v2233_v31, %v2232_v30  ;;  %v2234_v38 = vld [vmem:[%s4063_s3 + $0xc0] sm:$0xff]  ;;  %v538_v41 = vld [vmem:[%s4061_s1 + $0x30] sm:$0xff]  ;;  %s520_s27 = scalar_lea.vmem %s4090_s24, %s2294_s17 }
  0x7f   : > { %v2235_v39 = vld [vmem:[%s4063_s3 + $0xc8] sm:$0xff]  ;;  %v2869_v40 = vpack.c.bf16 %v537_v36, %v536_v35  ;;  %v539_v42 = vld [vmem:[%s4061_s1 + $0x38] sm:$0xff]  ;;  %v2215_v45 = vld [vmem:[%s4061_s1 + $0x80] sm:$0xff] }
  0x80   : > { %2856 = vmatpush3.bf16.msra.mxu0 %v2853_v11  ;;  %2900 = vmatpush3.bf16.msra.mxu1 %v2897_v23  ;;  %v2909_v43 = vpack.c.bf16 %v2235_v39, %v2234_v38  ;;  %v2873_v44 = vpack.c.bf16 %v539_v42, %v538_v41  ;;  %v2216_v46 = vld [vmem:[%s4061_s1 + $0x88] sm:$0xff]  ;;  %v2217_v48 = vld [vmem:[%s4061_s1 + $0x90] sm:$0xff]  ;;  %v2218_v49 = vld [vmem:[%s4061_s1 + $0x98] sm:$0xff] }
  0x81   : > { %2858 = vmatprep.subr.bf16.mxu0 %v2857_v15  ;;  %2902 = vmatprep.subr.bf16.mxu1 %v2901_v29  ;;  %v2877_v47 = vpack.c.bf16 %v2216_v46, %v2215_v45  ;;  %v2881_v51 = vpack.c.bf16 %v2218_v49, %v2217_v48  ;;  %v2219_v53 = vld [vmem:[%s4061_s1 + $0xa0] sm:$0xff]  ;;  %v2220_v54 = vld [vmem:[%s4061_s1 + $0xa8] sm:$0xff]  ;;  %v2221_v56 = vld [vmem:[%s4061_s1 + $0xb0] sm:$0xff] }
  0x82   : > { %v2885_v55 = vpack.c.bf16 %v2220_v54, %v2219_v53  ;;  %v2222_v57 = vld [vmem:[%s4061_s1 + $0xb8] sm:$0xff]  ;;  %v2236_v60 = vld [vmem:[%s4063_s3 + $0xd0] sm:$0xff]  ;;  %v2238_v63 = vld [vmem:[%s4063_s3 + $0xe0] sm:$0xff] }
  0x83   : > { %v540_v19 = vld [vmem:[#allocation2 + $0x1] sm:$0xff]  ;;  %v541_v32 = vld [vmem:[#allocation2 + $0x9] sm:$0xff]  ;;  %v2889_v58 = vpack.c.bf16 %v2222_v57, %v2221_v56  ;;  %v2237_v61 = vld [vmem:[%s4063_s3 + $0xd8] sm:$0xff] }
  0x84   : > { %2496 = vmatprep.mubr.msk.f32.mxu0 %vm523_vm0, %v540_v19  ;;  %2860 = vmatpush3.bf16.msra.mxu0 %v2857_v15  ;;  %v530_v34 = vld [vmem:[#allocation2] sm:$0xff]  ;;  %v531_v50 = vld [vmem:[#allocation2 + $0x8] sm:$0xff]  ;;  %v2913_v62 = vpack.c.bf16 %v2237_v61, %v2236_v60  ;;  %v2240_v3 = vld [vmem:[%s4063_s3 + $0xf0] sm:$0xff] }
  0x85   : > { %2862 = vmatprep.subr.bf16.mxu0 %v2861_v26  ;;  %2904 = vmatpush3.bf16.msra.mxu1 %v2901_v29  ;;  %v713_v52 = vld [vmem:[#allocation2 + $0x2] sm:$0xff]  ;;  %v714_v59 = vld [vmem:[#allocation2 + $0xa] sm:$0xff]  ;;  %v2241_v4 = vld [vmem:[%s4063_s3 + $0xf8] sm:$0xff] }
  0x86   : > { %2906 = vmatprep.subr.bf16.mxu1 %v2905_v37  ;;  %v2239_v1 = vld [vmem:[%s4063_s3 + $0xe8] sm:$0xff]  ;;  %v2921_v5 = vpack.c.bf16 %v2241_v4, %v2240_v3  ;;  %v825_v6 = vld [vmem:[%s4063_s3] sm:$0xff]  ;;  %v827_v14 = vld [vmem:[%s4063_s3 + $0x10] sm:$0xff] }
  0x87   : > { %2497 = vmatmul.mubr.msk.f32.vlgmr.msra.gmra.mrb[0].mxu0 %vm523_vm0, %v541_v32  ;;  %v2917_v2 = vpack.c.bf16 %v2239_v1, %v2238_v63  ;;  %v826_v7 = vld [vmem:[%s4063_s3 + $0x8] sm:$0xff]  ;;  %v2225_v9 = vld [vmem:[%s4062_s2] ss:$0 sm:$0xff]  ;;  %v828_v15 = vld [vmem:[%s4063_s3 + $0x18] sm:$0xff] }
  0x88   : > { %2864 = vmatpush3.bf16.msra.mxu0 %v2861_v26  ;;  %2515 = vmatprep.mubr.msk.f32.mxu0 %vm523_vm0, %v530_v34  ;;  %v2925_v8 = vpack.c.bf16 %v826_v7, %v825_v6  ;;  %v2929_v18 = vpack.c.bf16 %v828_v15, %v827_v14  ;;  %v829_v19 = vld [vmem:[%s4063_s3 + $0x20] sm:$0xff]  ;;  %v830_v20 = vld [vmem:[%s4063_s3 + $0x28] sm:$0xff]  ;;  %v831_v22 = vld [vmem:[%s4063_s3 + $0x30] sm:$0xff] }
  0x89   : > { %2866 = vmatprep.subr.bf16.mxu0 %v2865_v33  ;;  %2908 = vmatpush3.bf16.msra.mxu1 %v2905_v37  ;;  %v2933_v21 = vpack.c.bf16 %v830_v20, %v829_v19  ;;  %v832_v23 = vld [vmem:[%s4063_s3 + $0x38] sm:$0xff]  ;;  %v833_v26 = vld [vmem:[%s4063_s3 + $0x40] sm:$0xff]  ;;  %v834_v27 = vld [vmem:[%s4063_s3 + $0x48] sm:$0xff] }
  0x8a   : > { %2910 = vmatprep.subr.bf16.mxu1 %v2909_v43  ;;  %v2937_v25 = vpack.c.bf16 %v832_v23, %v831_v22  ;;  %v2941_v28 = vpack.c.bf16 %v834_v27, %v833_v26  ;;  %v835_v29 = vld [vmem:[%s4063_s3 + $0x50] sm:$0xff]  ;;  %v836_v30 = vld [vmem:[%s4063_s3 + $0x58] sm:$0xff]  ;;  %v837_v32 = vld [vmem:[%s4063_s3 + $0x60] sm:$0xff] }
  0x8b   : > { %v2945_v31 = vpack.c.bf16 %v836_v30, %v835_v29  ;;  %v839_v35 = vld [vmem:[%s4063_s3 + $0x70] sm:$0xff]  ;;  %v840_v36 = vld [vmem:[%s4063_s3 + $0x78] sm:$0xff]  ;;  %v2242_v38 = vld [vmem:[%s4063_s3 + $0x100] sm:$0xff] }
  0x8c   : > { %2868 = vmatpush3.bf16.msra.mxu0 %v2865_v33  ;;  %v838_v33 = vld [vmem:[%s4063_s3 + $0x68] sm:$0xff]  ;;  %v2953_v37 = vpack.c.bf16 %v840_v36, %v839_v35  ;;  %v2244_v41 = vld [vmem:[%s4063_s3 + $0x110] sm:$0xff]  ;;  %v2245_v42 = vld [vmem:[%s4063_s3 + $0x118] sm:$0xff] }
  0x8d   : > { %2870 = vmatprep.subr.bf16.mxu0 %v2869_v40  ;;  %2912 = vmatpush3.bf16.msra.mxu1 %v2909_v43  ;;  %v2949_v34 = vpack.c.bf16 %v838_v33, %v837_v32  ;;  %v2243_v39 = vld [vmem:[%s4063_s3 + $0x108] sm:$0xff]  ;;  %v2961_v43 = vpack.c.bf16 %v2245_v42, %v2244_v41  ;;  %v2246_v45 = vld [vmem:[%s4063_s3 + $0x120] sm:$0xff]  ;;  %v2248_v49 = vld [vmem:[%s4063_s3 + $0x130] sm:$0xff] }
  0x8e   : > { %2914 = vmatprep.subr.bf16.mxu1 %v2913_v62  ;;  %v2247_v46 = vld [vmem:[%s4063_s3 + $0x128] sm:$0xff]  ;;  %v2253_v56 = vld [vmem:[%s4063_s3 + $0x158] sm:$0xff]  ;;  %v2256_v61 = vld [vmem:[%s4063_s3 + $0x170] sm:$0xff] }
  0x8f   : > { %v2965_v48 = vpack.c.bf16 %v2247_v46, %v2246_v45  ;;  %v2251_v53 = vld [vmem:[%s4063_s3 + $0x148] sm:$0xff]  ;;  %v2258_v3 = vld [vmem:[%s4064_s4] ss:$0 sm:$0xff]  ;;  %v1192_v14 = vld [vmem:[#allocation6] sm:$0xff] }
  0x90   : > { %2872 = vmatpush3.bf16.msra.mxu0 %v2869_v40  ;;  %v2957_v40 = vpack.c.bf16 %v2243_v39, %v2242_v38  ;;  %v1271_v19 = vld [vmem:[%s4067_s7 + $0x20] sm:$0xff]  ;;  %v1272_v20 = vld [vmem:[%s4067_s7 + $0x28] sm:$0xff]  ;;  %v1273_v22 = vld [vmem:[%s4067_s7 + $0x30] sm:$0xff] }
  0x91   : > { %2874 = vmatprep.subr.bf16.mxu0 %v2873_v44  ;;  %2916 = vmatpush3.bf16.msra.mxu1 %v2913_v62  ;;  %v2257_v62 = vld [vmem:[%s4063_s3 + $0x178] sm:$0xff]  ;;  %v1276_v26 = vld [vmem:[%s4067_s7 + $0x48] sm:$0xff]  ;;  %v1353_v39 = vld [vmem:[%s4068_s8] sm:$0xff] }
  0x92   : > { %2918 = vmatprep.subr.bf16.mxu1 %v2917_v2  ;;  %v2985_v63 = vpack.c.bf16 %v2257_v62, %v2256_v61  ;;  %v1274_v23 = vld [vmem:[%s4067_s7 + $0x38] sm:$0xff]  ;;  %v1280_v32 = vld [vmem:[%s4067_s7 + $0x68] sm:$0xff]  ;;  %v1355_v45 = vld [vmem:[%s4068_s8 + $0x10] sm:$0xff] }
  0x93   : > { %v1278_v29 = vld [vmem:[%s4067_s7 + $0x58] sm:$0xff]  ;;  %v1366_v61 = vld [vmem:[%s4068_s8 + $0x68] sm:$0xff] }
  0x94   : > { %2876 = vmatpush3.bf16.msra.mxu0 %v2873_v44  ;;  %v1282_v35 = vld [vmem:[%s4067_s7 + $0x78] sm:$0xff] }
  0x95   : > { %2878 = vmatprep.subr.bf16.mxu0 %v2877_v47  ;;  %2920 = vmatpush3.bf16.msra.mxu1 %v2917_v2  ;;  %v3340_v2 = vmov 0.0|0.0   ;;  %v1356_v46 = vld [vmem:[%s4068_s8 + $0x18] sm:$0xff] }
  0x96   : > { %2922 = vmatprep.subr.bf16.mxu1 %v2921_v5 }
  0x97   : > { %2516 = vmatmul.mubr.msk.f32.vlgmr.msra.gmra.mrb[0].mxu0 %vm523_vm0, %v531_v50  ;;  %v2249_v50 = vld [vmem:[%s4063_s3 + $0x138] sm:$0xff] }
  0x98   : > { %2880 = vmatpush3.bf16.msra.mxu0 %v2877_v47  ;;  %2534 = vmatprep.mubr.msk.f32.mxu0 %vm523_vm0, %v713_v52  ;;  %v2250_v52 = vld [vmem:[%s4063_s3 + $0x140] sm:$0xff] }
  0x99   : > { %2882 = vmatprep.subr.bf16.mxu0 %v2881_v51  ;;  %2924 = vmatpush3.bf16.msra.mxu1 %v2921_v5  ;;  %v2973_v54 = vpack.c.bf16 %v2251_v53, %v2250_v52  ;;  %v1360_v52 = vld [vmem:[%s4068_s8 + $0x38] sm:$0xff] }
  0x9a   : > { %2926 = vmatprep.subr.bf16.mxu1 %v2925_v8 }
  0x9c   : > { %2884 = vmatpush3.bf16.msra.mxu0 %v2881_v51  ;;  %v2969_v51 = vpack.c.bf16 %v2249_v50, %v2248_v49  ;;  %v1358_v49 = vld [vmem:[%s4068_s8 + $0x28] sm:$0xff] }
  0x9d   : > { %2886 = vmatprep.subr.bf16.mxu0 %v2885_v55 }
  0xa0   : > { %2888 = vmatpush3.bf16.msra.mxu0 %v2885_v55  ;;  %v2252_v55 = vld [vmem:[%s4063_s3 + $0x150] sm:$0xff] }
  0xa1   : > { %2890 = vmatprep.subr.bf16.mxu0 %v2889_v58  ;;  %v2977_v57 = vpack.c.bf16 %v2253_v56, %v2252_v55  ;;  %v1362_v55 = vld [vmem:[%s4068_s8 + $0x48] sm:$0xff] }
  0xa4   : > { %2892 = vmatpush3.bf16.msra.mxu0 %v2889_v58  ;;  %v2254_v58 = vld [vmem:[%s4063_s3 + $0x160] sm:$0xff] }
  0xa5   : > { %2989 = vmatprep.subr.bf16.mxu0 %v3340_v2 }
  0xa7   : > { %2535 = vmatmul.mubr.msk.f32.vlgmr.msra.gmra.mrb[0].mxu0 %vm523_vm0, %v714_v59  ;;  %v2255_v59 = vld [vmem:[%s4063_s3 + $0x168] sm:$0xff] }
  0xa8   : > { %v2981_v60 = vpack.c.bf16 %v2255_v59, %v2254_v58  ;;  %2646 = vmatprep.mubr.msk.f32.mxu0 %vm3341_vm2, %v3339_v0  ;;  %v1364_v58 = vld [vmem:[%s4068_s8 + $0x58] sm:$0xff] }
 0x17a   : > { %v2536_v10 = vpop.f32.mrb[0].mxu0 }
 0x17b   : > { %v815_v11 = vadd.f32 %v2536_v10, %v2225_v9  ;;  %v796_v12 = vpop.f32.mrb[1].mxu0 }
 0x17c   : > { %v814_v13 = vadd.f32 %v2225_v9, %v796_v12  ;;  %v1267_v12 = vld [vmem:[%s4067_s7] sm:$0xff] }
 0x17d   : > { %v817_v16 = vmax.f32 %v815_v11, 0.0  ;;  %v1117_v11 = vld [vmem:[%s4065_s5] sm:$0xff] }
 0x17e   : > { %v816_v17 = vmax.f32 %v814_v13, 0.0  ;;  %v1268_v13 = vld [vmem:[%s4067_s7 + $0x8] sm:$0xff] }
 0x17f   : > { %822 = vst [vmem:[#allocation3 + $0x9] sm:$0xff] %v817_v16  ;;  %v2996_v15 = vpack.c.bf16 %v1268_v13, %v1267_v12  ;;  %v1446_v13 = vld [vmem:[%s4069_s9 + $0x10] sm:$0xff] }
 0x180   : > { %821 = vst [vmem:[#allocation3 + $0x1] sm:$0xff] %v816_v17  ;;  %2569 = vmatprep.mubr.f32.mxu1 %v816_v17  ;;  %v1270_v17 = vld [vmem:[%s4067_s7 + $0x18] sm:$0xff] }
 0x181   : > { %2570 = vmatmul.mubr.f32.vlgmr.msra.gmra.mrb[0].mxu1 %v817_v16  ;;  %v1269_v16 = vld [vmem:[%s4067_s7 + $0x10] sm:$0xff] }
 0x182   : > { %2928 = vmatpush3.bf16.msra.mxu1 %v2925_v8 }
 0x183   : > { %2930 = vmatprep.subr.bf16.mxu1 %v2929_v18 }
 0x186   : > { %2932 = vmatpush3.bf16.msra.mxu1 %v2929_v18  ;;  %v1011_v1 = vld [vmem:[#allocation3 + $0xa] sm:$0xff]  ;;  %v2999_v18 = vpack.c.bf16 %v1270_v17, %v1269_v16 }
 0x187   : > { %v823_v24 = vld [vmem:[#allocation3] sm:$0xff]  ;;  %2934 = vmatprep.subr.bf16.mxu1 %v2933_v21  ;;  %v824_v44 = vld [vmem:[#allocation3 + $0x8] sm:$0xff]  ;;  %v2266_v17 = vld [vmem:[%s4069_s9 + $0x68] sm:$0xff] }
 0x188   : > { %2604 = vmatprep.mubr.f32.mxu1 %v823_v24  ;;  %v1010_v47 = vld [vmem:[#allocation3 + $0x2] sm:$0xff]  ;;  %v3005_v24 = vpack.c.bf16 %v1274_v23, %v1273_v22  ;;  %v2267_v22 = vld [vmem:[%s4069_s9 + $0x70] sm:$0xff] }
 0x189   : > { %v2265_v16 = vld [vmem:[%s4069_s9 + $0x60] sm:$0xff]  ;;  %v2268_v23 = vld [vmem:[%s4069_s9 + $0x78] sm:$0xff] }
 0x18a   : > { %2936 = vmatpush3.bf16.msra.mxu1 %v2933_v21  ;;  %v3002_v21 = vpack.c.bf16 %v1272_v20, %v1271_v19  ;;  %v1448_v19 = vld [vmem:[%s4069_s9 + $0x20] sm:$0xff]  ;;  %v1449_v20 = vld [vmem:[%s4069_s9 + $0x28] sm:$0xff] }
 0x18b   : > { %2938 = vmatprep.subr.bf16.mxu1 %v2937_v25 }
 0x18e   : > { %2940 = vmatpush3.bf16.msra.mxu1 %v2937_v25  ;;  %v1275_v25 = vld [vmem:[%s4067_s7 + $0x40] sm:$0xff] }
 0x18f   : > { %2942 = vmatprep.subr.bf16.mxu1 %v2941_v28  ;;  %v3008_v27 = vpack.c.bf16 %v1276_v26, %v1275_v25  ;;  %v3053_v25 = vpack.c.bf16 %v2268_v23, %v2267_v22  ;;  %v1451_v26 = vld [vmem:[%s4069_s9 + $0x38] sm:$0xff] }
 0x190   : > { %v1798_v23 = vld [vmem:[#allocation10 + $0x30] sm:$0xff] }
 0x192   : > { %2944 = vmatpush3.bf16.msra.mxu1 %v2941_v28  ;;  %v1277_v28 = vld [vmem:[%s4067_s7 + $0x50] sm:$0xff] }
 0x193   : > { %2946 = vmatprep.subr.bf16.mxu1 %v2945_v31  ;;  %v3011_v30 = vpack.c.bf16 %v1278_v29, %v1277_v28 }
 0x196   : > { %2948 = vmatpush3.bf16.msra.mxu1 %v2945_v31  ;;  %v1279_v31 = vld [vmem:[%s4067_s7 + $0x60] sm:$0xff] }
 0x197   : > { %2950 = vmatprep.subr.bf16.mxu1 %v2949_v34  ;;  %v3014_v33 = vpack.c.bf16 %v1280_v32, %v1279_v31 }
 0x19a   : > { %2952 = vmatpush3.bf16.msra.mxu1 %v2949_v34  ;;  %v1281_v34 = vld [vmem:[%s4067_s7 + $0x70] sm:$0xff] }
 0x19b   : > { %2954 = vmatprep.subr.bf16.mxu1 %v2953_v37  ;;  %v3017_v36 = vpack.c.bf16 %v1282_v35, %v1281_v34  ;;  %v2272_v34 = vld [vmem:[%s4069_s9 + $0x88] sm:$0xff] }
 0x19e   : > { %2956 = vmatpush3.bf16.msra.mxu1 %v2953_v37 }
 0x19f   : > { %2958 = vmatprep.subr.bf16.mxu1 %v2957_v40 }
 0x1a1   : > { %2605 = vmatmul.mubr.f32.vlgmr.msra.gmra.mrb[0].mxu1 %v824_v44 }
 0x1a2   : > { %2960 = vmatpush3.bf16.msra.mxu1 %v2957_v40  ;;  %2639 = vmatprep.mubr.f32.mxu1 %v1010_v47  ;;  %v1354_v40 = vld [vmem:[%s4068_s8 + $0x8] sm:$0xff]  ;;  %v3023_v47 = vpack.c.bf16 %v1356_v46, %v1355_v45 }
 0x1a3   : > { %2962 = vmatprep.subr.bf16.mxu1 %v2961_v43  ;;  %v3020_v42 = vpack.c.bf16 %v1354_v40, %v1353_v39 }
 0x1a6   : > { %2964 = vmatpush3.bf16.msra.mxu1 %v2961_v43 }
 0x1a7   : > { %2966 = vmatprep.subr.bf16.mxu1 %v2965_v48 }
 0x1aa   : > { %2968 = vmatpush3.bf16.msra.mxu1 %v2965_v48  ;;  %v1357_v48 = vld [vmem:[%s4068_s8 + $0x20] sm:$0xff] }
 0x1ab   : > { %2970 = vmatprep.subr.bf16.mxu1 %v2969_v51  ;;  %v3026_v50 = vpack.c.bf16 %v1358_v49, %v1357_v48  ;;  %v1803_v48 = vld [vmem:[#allocation10 + $0x40] sm:$0xff]  ;;  %v1804_v49 = vld [vmem:[#allocation10 + $0x48] sm:$0xff] }
 0x1ae   : > { %2972 = vmatpush3.bf16.msra.mxu1 %v2969_v51  ;;  %v1359_v51 = vld [vmem:[%s4068_s8 + $0x30] sm:$0xff] }
 0x1af   : > { %2974 = vmatprep.subr.bf16.mxu1 %v2973_v54  ;;  %v3029_v53 = vpack.c.bf16 %v1360_v52, %v1359_v51  ;;  %v3079_v51 = vpack.c.bf16 %v1804_v49, %v1803_v48  ;;  %v1806_v52 = vld [vmem:[#allocation10 + $0x58] sm:$0xff] }
 0x1b2   : > { %2976 = vmatpush3.bf16.msra.mxu1 %v2973_v54  ;;  %v1361_v54 = vld [vmem:[%s4068_s8 + $0x40] sm:$0xff] }
 0x1b3   : > { %2978 = vmatprep.subr.bf16.mxu1 %v2977_v57  ;;  %v3032_v56 = vpack.c.bf16 %v1362_v55, %v1361_v54 }
 0x1b6   : > { %2980 = vmatpush3.bf16.msra.mxu1 %v2977_v57  ;;  %v1363_v57 = vld [vmem:[%s4068_s8 + $0x50] sm:$0xff] }
 0x1b7   : > { %2982 = vmatprep.subr.bf16.mxu1 %v2981_v60  ;;  %v3035_v59 = vpack.c.bf16 %v1364_v58, %v1363_v57 }
 0x1ba   : > { %2984 = vmatpush3.bf16.msra.mxu1 %v2981_v60  ;;  %v1365_v60 = vld [vmem:[%s4068_s8 + $0x60] sm:$0xff] }
 0x1bb   : > { %2986 = vmatprep.subr.bf16.mxu1 %v2985_v63  ;;  %v3038_v62 = vpack.c.bf16 %v1366_v61, %v1365_v60 }
 0x1be   : > { %2988 = vmatpush3.bf16.msra.mxu1 %v2985_v63  ;;  %v1367_v63 = vld [vmem:[%s4068_s8 + $0x70] sm:$0xff] }
 0x1bf   : > { %3055 = vmatprep.subr.bf16.mxu1 %v3340_v2 }
 0x1c1   : > { %2640 = vmatmul.mubr.f32.vlgmr.msra.gmra.mrb[0].mxu1 %v1011_v1  ;;  %v1368_v1 = vld [vmem:[%s4068_s8 + $0x78] sm:$0xff] }
 0x1c2   : > { %2761 = vmatprep.mubr.msk.f32.mxu1 %vm3341_vm2, %v3339_v0 }
 0x294   : > { %v2641_v4 = vpop.f32.mrb[0].mxu1 }
 0x295   : > { %v1114_v5 = vadd.f32 %v2641_v4, %v2258_v3  ;;  %v1095_v6 = vpop.f32.mrb[1].mxu1  ;;  %v2261_v4 = vld [vmem:[%s4069_s9 + $0x40] sm:$0xff] }
 0x296   : > { %v1113_v7 = vadd.f32 %v2258_v3, %v1095_v6  ;;  %v3041_v3 = vpack.c.bf16 %v1368_v1, %v1367_v63  ;;  %v1444_v6 = vld [vmem:[%s4069_s9] sm:$0xff]  ;;  %v1702_v1 = vld [vmem:[%s4071_s11 + $0x8] sm:$0xff] }
 0x297   : > { %v1116_v8 = vmax.f32 %v1114_v5, 0.0  ;;  %v2262_v5 = vld [vmem:[%s4069_s9 + $0x48] sm:$0xff] }
 0x298   : > { %v1115_v9 = vmax.f32 %v1113_v7, 0.0  ;;  %v3044_v7 = vpack.c.bf16 %v2262_v5, %v2261_v4  ;;  %v1808_v4 = vld [vmem:[#allocation10 + $0x68] sm:$0xff] }
 0x29a   : > { %v2990_v10 = vpack.c.bf16 %v1116_v8, %v1115_v9  ;;  %v1445_v8 = vld [vmem:[%s4069_s9 + $0x8] sm:$0xff]  ;;  %v2263_v9 = vld [vmem:[%s4069_s9 + $0x50] sm:$0xff] }
 0x29c   : > { %2991 = vmatpush3.bf16.msra.mxu0 %v2990_v10 }
 0x29d   : > { %2992 = vmatprep.subr.bf16.mxu0 %v3340_v2 }
 0x29f   : > { %2647 = vmatmul.mubr.msk.f32.vlgmr.msra.gmra.mrb[2].mxu0 %vm1118_vm3, %v1117_v11  ;;  %v3056_v11 = vpack.c.bf16 %v1445_v8, %v1444_v6  ;;  %v1809_v6 = vld [vmem:[#allocation10 + $0x70] sm:$0xff] }
 0x2a0   : > { %2994 = vmatpush3.bf16.msra.mxu0 %v2990_v10  ;;  %2653 = vmatprep.mubr.msk.f32.mxu0 %vm3341_vm2, %v3339_v0  ;;  %v2264_v10 = vld [vmem:[%s4069_s9 + $0x58] sm:$0xff] }
 0x2a1   : > { %2995 = vmatprep.subr.bf16.mxu0 %v3340_v2  ;;  %v3047_v12 = vpack.c.bf16 %v2264_v10, %v2263_v9  ;;  %3057 = vmatpush3.bf16.msra.mxu1 %v3056_v11  ;;  %v1792_v9 = vld [vmem:[#allocation10] sm:$0xff]  ;;  %v1793_v10 = vld [vmem:[#allocation10 + $0x8] sm:$0xff] }
 0x2a2   : > { %3058 = vmatprep.subr.bf16.mxu1 %v3340_v2  ;;  %v3095_v11 = vpack.c.bf16 %v1793_v10, %v1792_v9 }
 0x2a3   : > { %2654 = vmatmul.mubr.msk.f32.vlgmr.msra.gmra.mrb[4].mxu0 %vm1118_vm3, %v1192_v14  ;;  %v1447_v14 = vld [vmem:[%s4069_s9 + $0x18] sm:$0xff] }
 0x2a4   : > { %2997 = vmatpush3.bf16.msra.mxu0 %v2996_v15  ;;  %2688 = vmatprep.mubr.msk.f32.mxu0 %vm3341_vm2, %v3339_v0  ;;  %v3059_v15 = vpack.c.bf16 %v1447_v14, %v1446_v13  ;;  %v1794_v14 = vld [vmem:[#allocation10 + $0x10] sm:$0xff] }
 0x2a5   : > { %2998 = vmatprep.subr.bf16.mxu0 %v3340_v2 }
 0x2a6   : > { %3060 = vmatpush3.bf16.msra.mxu1 %v3059_v15  ;;  %v1795_v15 = vld [vmem:[#allocation10 + $0x18] sm:$0xff] }
 0x2a7   : > { %3061 = vmatprep.subr.bf16.mxu1 %v3340_v2 }
 0x2a8   : > { %3000 = vmatpush3.bf16.msra.mxu0 %v2999_v18  ;;  %v3050_v18 = vpack.c.bf16 %v2266_v17, %v2265_v16  ;;  %v3099_v17 = vpack.c.bf16 %v1795_v15, %v1794_v14 }
 0x2a9   : > { %3001 = vmatprep.subr.bf16.mxu0 %v3340_v2 }
 0x2ac   : > { %3003 = vmatpush3.bf16.msra.mxu0 %v3002_v21  ;;  %v3062_v21 = vpack.c.bf16 %v1449_v20, %v1448_v19  ;;  %v1796_v19 = vld [vmem:[#allocation10 + $0x20] sm:$0xff]  ;;  %v1797_v20 = vld [vmem:[#allocation10 + $0x28] sm:$0xff] }
 0x2ad   : > { %3004 = vmatprep.subr.bf16.mxu0 %v3340_v2  ;;  %v3103_v22 = vpack.c.bf16 %v1797_v20, %v1796_v19 }
 0x2ae   : > { %3063 = vmatpush3.bf16.msra.mxu1 %v3062_v21 }
 0x2af   : > { %3064 = vmatprep.subr.bf16.mxu1 %v3340_v2 }
 0x2b0   : > { %3006 = vmatpush3.bf16.msra.mxu0 %v3005_v24  ;;  %v1450_v24 = vld [vmem:[%s4069_s9 + $0x30] sm:$0xff] }
 0x2b1   : > { %3007 = vmatprep.subr.bf16.mxu0 %v3340_v2 }
 0x2b4   : > { %3009 = vmatpush3.bf16.msra.mxu0 %v3008_v27  ;;  %v3065_v27 = vpack.c.bf16 %v1451_v26, %v1450_v24  ;;  %v1799_v24 = vld [vmem:[#allocation10 + $0x38] sm:$0xff]  ;;  %v1976_v26 = vld [vmem:[#allocation10 + $0x80] sm:$0xff] }
 0x2b5   : > { %3010 = vmatprep.subr.bf16.mxu0 %v3340_v2 }
 0x2b6   : > { %3066 = vmatpush3.bf16.msra.mxu1 %v3065_v27  ;;  %v1977_v27 = vld [vmem:[#allocation10 + $0x88] sm:$0xff] }
 0x2b7   : > { %3080 = vmatprep.subr.bf16.mxu1 %v3079_v51 }
 0x2b8   : > { %3012 = vmatpush3.bf16.msra.mxu0 %v3011_v30 }
 0x2b9   : > { %3013 = vmatprep.subr.bf16.mxu0 %v3340_v2 }
 0x2bc   : > { %3015 = vmatpush3.bf16.msra.mxu0 %v3014_v33  ;;  %v2271_v33 = vld [vmem:[%s4069_s9 + $0x80] sm:$0xff] }
 0x2bd   : > { %3016 = vmatprep.subr.bf16.mxu0 %v3340_v2  ;;  %v3068_v35 = vpack.c.bf16 %v2272_v34, %v2271_v33  ;;  %v1980_v33 = vld [vmem:[#allocation10 + $0xa0] sm:$0xff]  ;;  %v1981_v34 = vld [vmem:[#allocation10 + $0xa8] sm:$0xff] }
 0x2c0   : > { %3018 = vmatpush3.bf16.msra.mxu0 %v3017_v36  ;;  %v2273_v36 = vld [vmem:[%s4069_s9 + $0x90] sm:$0xff] }
 0x2c1   : > { %3019 = vmatprep.subr.bf16.mxu0 %v3340_v2 }
 0x372   : > { %v1188_v37 = vpop.f32.mrb[2].mxu0 }
 0x373   : > { %v2648_v38 = vpop.f32.mrb[3].mxu0 }
 0x376   : > { %v1262_v41 = vpop.f32.mrb[4].mxu0 }
 0x377   : > { %v1266_v43 = vmax.f32 %v1188_v37, %v1262_v41  ;;  %v2655_v44 = vpop.f32.mrb[5].mxu0  ;;  %v2274_v37 = vld [vmem:[%s4069_s9 + $0x98] sm:$0xff]  ;;  %v2275_v41 = vld [vmem:[%s4069_s9 + $0xa0] sm:$0xff] }
 0x378   : > { %v3071_v40 = vpack.c.bf16 %v2274_v37, %v2273_v36  ;;  %v2277_v44 = vld [vmem:[%s4069_s9 + $0xb0] sm:$0xff]  ;;  %v3119_v36 = vpack.c.bf16 %v1981_v34, %v1980_v33 }
 0x379   : > { %2689 = vmatmul.mubr.f32.vlgmr.msra.gmra.mrb[6].mxu0 %v1266_v43  ;;  %v1982_v37 = vld [vmem:[#allocation10 + $0xb0] sm:$0xff] }
 0x37a   : > { %3021 = vmatpush3.bf16.msra.mxu0 %v3020_v42  ;;  %2723 = vmatprep.mubr.msk.f32.mxu0 %vm3341_vm2, %v3339_v0  ;;  %v2276_v42 = vld [vmem:[%s4069_s9 + $0xa8] sm:$0xff] }
 0x37b   : > { %3022 = vmatprep.subr.bf16.mxu0 %v3340_v2 }
 0x37e   : > { %3024 = vmatpush3.bf16.msra.mxu0 %v3023_v47  ;;  %v1701_v47 = vld [vmem:[%s4071_s11] sm:$0xff] }
 0x37f   : > { %3025 = vmatprep.subr.bf16.mxu0 %v3340_v2 }
 0x382   : > { %3027 = vmatpush3.bf16.msra.mxu0 %v3026_v50  ;;  %v1805_v50 = vld [vmem:[#allocation10 + $0x50] sm:$0xff] }
 0x383   : > { %3028 = vmatprep.subr.bf16.mxu0 %v3340_v2 }
 0x386   : > { %3030 = vmatpush3.bf16.msra.mxu0 %v3029_v53  ;;  %v3083_v53 = vpack.c.bf16 %v1806_v52, %v1805_v50 }
 0x387   : > { %3031 = vmatprep.subr.bf16.mxu0 %v3340_v2 }
 0x38a   : > { %3033 = vmatpush3.bf16.msra.mxu0 %v3032_v56 }
 0x38b   : > { %3034 = vmatprep.subr.bf16.mxu0 %v3340_v2 }
 0x38e   : > { %3036 = vmatpush3.bf16.msra.mxu0 %v3035_v59  ;;  %v2280_v59 = vld [vmem:[#allocation8] ss:$0 sm:$0xff] }
 0x38f   : > { %3037 = vmatprep.subr.bf16.mxu0 %v3340_v2 }
 0x392   : > { %3039 = vmatpush3.bf16.msra.mxu0 %v3038_v62 }
 0x393   : > { %3040 = vmatprep.subr.bf16.mxu0 %v3340_v2 }
 0x396   : > { %3042 = vmatpush3.bf16.msra.mxu0 %v3041_v3  ;;  %v1807_v3 = vld [vmem:[#allocation10 + $0x60] sm:$0xff] }
 0x397   : > { %3043 = vmatprep.subr.bf16.mxu0 %v3340_v2  ;;  %v3087_v5 = vpack.c.bf16 %v1808_v4, %v1807_v3 }
 0x399   : > { %2724 = vmatmul.mubr.f32.vlgmr.msra.gmra.mrb[8].mxu0 %v1266_v43  ;;  %v3074_v43 = vpack.c.bf16 %v2276_v42, %v2275_v41  ;;  %v2289_v41 = vld [vmem:[#allocation11] ss:$0 sm:$0xff] }
 0x39a   : > { %2742 = vmatprep.mubr.msk.f32.mxu0 %vm3341_vm2, %v3339_v0  ;;  %3045 = vmatpush3.bf16.msra.mxu0 %v3044_v7  ;;  %v1810_v7 = vld [vmem:[#allocation10 + $0x78] sm:$0xff] }
 0x39b   : > { %3046 = vmatprep.subr.bf16.mxu0 %v3340_v2  ;;  %v3091_v8 = vpack.c.bf16 %v1810_v7, %v1809_v6 }
 0x39e   : > { %3048 = vmatpush3.bf16.msra.mxu0 %v3047_v12 }
 0x39f   : > { %3049 = vmatprep.subr.bf16.mxu0 %v3340_v2 }
 0x3a2   : > { %3051 = vmatpush3.bf16.msra.mxu0 %v3050_v18 }
 0x3a3   : > { %3052 = vmatprep.subr.bf16.mxu0 %v3340_v2 }
 0x3a6   : > { %3054 = vmatpush3.bf16.msra.mxu0 %v3053_v25  ;;  %v3107_v25 = vpack.c.bf16 %v1799_v24, %v1798_v23 }
 0x3a7   : > { %3067 = vmatprep.subr.bf16.mxu0 %v3340_v2 }
 0x44c   : > { %v1349_v28 = vpop.f32.mrb[6].mxu0 }
 0x44d   : > { %v2690_v29 = vpop.f32.mrb[7].mxu0 }
 0x44e   : > { %v1978_v29 = vld [vmem:[#allocation10 + $0x90] sm:$0xff] }
 0x46c   : > { %v1435_v30 = vpop.f32.mrb[8].mxu0 }
 0x46d   : > { %v1439_v31 = vmax.f32 %v1349_v28, %v1435_v30  ;;  %v2725_v32 = vpop.f32.mrb[9].mxu0  ;;  %v3111_v28 = vpack.c.bf16 %v1977_v27, %v1976_v26  ;;  %v1979_v30 = vld [vmem:[#allocation10 + $0x98] sm:$0xff] }
 0x46f   : > { %1442 = vst.msk [vmem:[#allocation4 + $0x1] sm:$0xff] %vm523_vm0, %v1439_v31  ;;  %v3115_v31 = vpack.c.bf16 %v1979_v30, %v1978_v29 }
 0x476   : > { %v1452_v38 = vld [vmem:[#allocation4 + $0x1] sm:$0xff] }
 0x477   : > { %v1443_v39 = vld [vmem:[#allocation4] sm:$0xff]  ;;  %2743 = vmatmul.mubr.msk.f32.vlgmr.msra.gmra.mrb[10].mxu0 %vm523_vm0, %v1452_v38  ;;  %v1983_v38 = vld [vmem:[#allocation10 + $0xb8] sm:$0xff] }
 0x478   : > { %2762 = vmatmul.mubr.msk.f32.vlgmr.msra.gmra.mrb[2].mxu1 %vm523_vm0, %v1443_v39  ;;  %3069 = vmatpush3.bf16.msra.mxu0 %v3068_v35  ;;  %v1608_v46 = vld [vmem:[#allocation4 + $0x2] sm:$0xff]  ;;  %v3123_v39 = vpack.c.bf16 %v1983_v38, %v1982_v37 }
 0x479   : > { %2780 = vmatprep.mubr.msk.f32.mxu0 %vm3341_vm2, %v3339_v0  ;;  %3070 = vmatprep.subr.bf16.mxu0 %v3340_v2  ;;  %v2278_v0 = vld [vmem:[%s4069_s9 + $0xb8] sm:$0xff] }
 0x47a   : > { %v3077_v45 = vpack.c.bf16 %v2278_v0, %v2277_v44  ;;  %3082 = vmatpush3.bf16.msra.mxu1 %v3079_v51 }
 0x47b   : > { %3084 = vmatprep.subr.bf16.mxu1 %v3083_v53 }
 0x47c   : > { %3072 = vmatpush3.bf16.msra.mxu0 %v3071_v40 }
 0x47d   : > { %3073 = vmatprep.subr.bf16.mxu0 %v3340_v2 }
 0x47e   : > { %3086 = vmatpush3.bf16.msra.mxu1 %v3083_v53 }
 0x47f   : > { %3088 = vmatprep.subr.bf16.mxu1 %v3087_v5 }
 0x480   : > { %3075 = vmatpush3.bf16.msra.mxu0 %v3074_v43 }
 0x481   : > { %3076 = vmatprep.subr.bf16.mxu0 %v3340_v2 }
 0x482   : > { %3090 = vmatpush3.bf16.msra.mxu1 %v3087_v5 }
 0x483   : > { %3092 = vmatprep.subr.bf16.mxu1 %v3091_v8 }
 0x484   : > { %3078 = vmatpush3.bf16.msra.mxu0 %v3077_v45 }
 0x486   : > { %3094 = vmatpush3.bf16.msra.mxu1 %v3091_v8 }
 0x487   : > { %2781 = vmatmul.mubr.msk.f32.vlgmr.msra.gmra.mrb[12].mxu0 %vm523_vm0, %v1608_v46  ;;  %3096 = vmatprep.subr.bf16.mxu1 %v3095_v11 }
 0x488   : > { %2785 = vmatprep.mubr.msk.f32.mxu0 %vm1703_vm4, %v1701_v47 }
 0x54a   : > { %v1531_v2 = vpop.f32.mrb[10].mxu0 }
 0x54b   : > { %v1604_v54 = vpop.f32.mrb[2].mxu1  ;;  %v2744_v56 = vpop.f32.mrb[11].mxu0 }
 0x54c   : > { %v1605_v55 = vadd.f32 %v1604_v54, %v1531_v2  ;;  %v2763_v57 = vpop.f32.mrb[3].mxu1 }
 0x55a   : > { %v1687_v58 = vpop.f32.mrb[12].mxu0 }
 0x55b   : > { %v1691_v60 = vadd.f32 %v1687_v58, %v1605_v55  ;;  %v2782_v61 = vpop.f32.mrb[13].mxu0 }
 0x55d   : > { %v1699_v62 = vadd.f32 %v2280_v59, %v1691_v60 }
 0x55f   : > { %v1700_v63 = vmax.f32 %v1699_v62, 0.0 }
 0x561   : > { %2783 = vmatprep.subr.mxu0 %v1700_v63 }
 0x562   : > { %2784 = vmatpush3.msra.mxu0 %v1700_v63 }
 0x563   : > { %2786 = vmatmul.mubr.msk.f32.vlgmr.msra.gmra.mrb[14].mxu0 %vm1703_vm4, %v1702_v1 }
 0x636   : > { %v2787_v12 = vpop.f32.mrb[14].mxu0 }
 0x637   : > { %1789 = vst.msk [vmem:[#allocation5 + $0x9] sm:$0xff] %vm523_vm0, %v2787_v12  ;;  %v1776_v13 = vpop.f32.mrb[15].mxu0 }
 0x638   : > { %1788 = vst.msk [vmem:[#allocation5 + $0x1] sm:$0xff] %vm523_vm0, %v1776_v13 }
 0x63e   : > { %v1801_v18 = vld [vmem:[#allocation5 + $0x9] sm:$0xff] }
 0x63f   : > { %v1800_v16 = vld [vmem:[#allocation5 + $0x1] sm:$0xff]  ;;  %v1974_v40 = vld [vmem:[#allocation5 + $0xa] sm:$0xff] }
 0x640   : > { %2804 = vmatprep.mubr.msk.f32.mxu1 %vm523_vm0, %v1800_v16  ;;  %v1790_v21 = vld [vmem:[#allocation5] sm:$0xff]  ;;  %v1791_v32 = vld [vmem:[#allocation5 + $0x8] sm:$0xff] }
 0x641   : > { %2805 = vmatmul.mubr.msk.f32.vlgmr.msra.gmra.mrb[4].mxu1 %vm523_vm0, %v1801_v18  ;;  %v1973_v35 = vld [vmem:[#allocation5 + $0x2] sm:$0xff] }
 0x642   : > { %3098 = vmatpush3.bf16.msra.mxu1 %v3095_v11  ;;  %2823 = vmatprep.mubr.msk.f32.mxu1 %vm523_vm0, %v1790_v21 }
 0x643   : > { %3100 = vmatprep.subr.bf16.mxu1 %v3099_v17 }
 0x646   : > { %3102 = vmatpush3.bf16.msra.mxu1 %v3099_v17 }
 0x647   : > { %3104 = vmatprep.subr.bf16.mxu1 %v3103_v22 }
 0x64a   : > { %3106 = vmatpush3.bf16.msra.mxu1 %v3103_v22 }
 0x64b   : > { %3108 = vmatprep.subr.bf16.mxu1 %v3107_v25 }
 0x64e   : > { %3110 = vmatpush3.bf16.msra.mxu1 %v3107_v25 }
 0x64f   : > { %3112 = vmatprep.subr.bf16.mxu1 %v3111_v28 }
 0x651   : > { %2824 = vmatmul.mubr.msk.f32.vlgmr.msra.gmra.mrb[4].mxu1 %vm523_vm0, %v1791_v32 }
 0x652   : > { %3114 = vmatpush3.bf16.msra.mxu1 %v3111_v28  ;;  %2842 = vmatprep.mubr.msk.f32.mxu1 %vm523_vm0, %v1973_v35 }
 0x653   : > { %3116 = vmatprep.subr.bf16.mxu1 %v3115_v31 }
 0x656   : > { %3118 = vmatpush3.bf16.msra.mxu1 %v3115_v31 }
 0x657   : > { %3120 = vmatprep.subr.bf16.mxu1 %v3119_v36 }
 0x65a   : > { %3122 = vmatpush3.bf16.msra.mxu1 %v3119_v36 }
 0x65b   : > { %3124 = vmatprep.subr.bf16.mxu1 %v3123_v39 }
 0x65e   : > { %3126 = vmatpush3.bf16.msra.mxu1 %v3123_v39 }
 0x661   : > { %2843 = vmatmul.mubr.msk.f32.vlgmr.msra.gmra.mrb[4].mxu1 %vm523_vm0, %v1974_v40 }
 0x734   : > { %v2844_v42 = vpop.f32.mrb[4].mxu1 }
 0x735   : > { %v2075_v43 = vadd.f32 %v2844_v42, %v2289_v41  ;;  %v2056_v44 = vpop.f32.mrb[5].mxu1 }
 0x736   : > { %v2074_v0 = vadd.f32 %v2289_v41, %v2056_v44 }
 0x737   : > { %v2291_v45 = vmul.f32 -1.442695, %v2075_v43 }
 0x738   : > { %v2290_v46 = vmul.f32 -1.442695, %v2074_v0 }
 0x739   : > { %3193 = vpow2.f32 %v2291_v45 }
 0x73a   : > { %3195 = vpow2.f32 %v2290_v46 }
 0x743   : > { %v3194_v47 = vpop.eup %3193 }
 0x744   : > { %v3196_v48 = vpop.eup %3195  ;;  %v2083_v49 = vadd.f32 1.0, %v3194_v47 }
 0x745   : > { %v2082_v50 = vadd.f32 1.0, %v3196_v48 }
 0x746   : > { %3197 = vrcp.f32 %v2083_v49 }
 0x747   : > { %3199 = vrcp.f32 %v2082_v50 }
 0x750   : > { %v3198_v51 = vpop.eup %3197 }
 0x751   : > { %v3200_v52 = vpop.eup %3199  ;;  %2089 = vst.msk [vmem:[%s520_s27 + $0x8] sm:$0xff] %vm523_vm0, %v3198_v51 }
 0x752   : > { %2088 = vst.msk [vmem:[%s520_s27] sm:$0xff] %vm523_vm0, %v3200_v52 }
 0x753 PF: > { %s4091_s28 = sld [smem:[#allocation16_spill]] }
 0x759   : > { %s27_s29 = sadd.s32 1, %s4091_s28  }
 0x75a   : > { %p24_p6 = scmp.ge.s32.totalorder %s27_s29, 4  }
 0x75c   :  { %26 = sbr.rel (!%p24_p6) target bundleno = 5 (0x5), region = 131 }
 0x763   :  { %2111 = vsyncpa [#allocation7], 1 }
 0x764   :  { %2113 = vsyncpa [#allocation7 + $0x1], 1 }
 0x765   :  { %2114 = vsyncpa [#allocation9], 1 }
 0x766   :  { %2115 = vsyncpa [#allocation12], 1 }

</bundles_post_ra>
